<compile_context>
chip_gen: v6e
topology: v6e:2x2x1
jax: 0.10.0
libtpu: 0.0.40
codegen_flags: <defaults>
</compile_context>

<pallas_src>
import jax
import jax.numpy as jnp
import numpy as np
from jax.experimental import pallas as pl
from jax.experimental.pallas import tpu as pltpu

INPUT_DIM = 32      # == hidden_dim (required for the reference forward to be consistent)
HIDDEN_DIM = 32
NUM_HEADS = 4
ANALYZER_DIM = 64   # literal 64 in the PyTorch attention_analyzer
HEADS_OUT = 5       # [focus, analysis, distraction(2), break]


# ----------------------------------------------------------------------------
# Fused kernel: one grid step == one MHA batch element (dim1 of the input)
# ----------------------------------------------------------------------------
def _fused_kernel(x_ref, wqk_ref, bqk_ref, wvo_ref, bvo_ref, bout_ref,
                  w1_ref, b1_ref, w2fa_ref, b2fa_ref, w3fa_ref, b3fa_ref,
                  w2db_ref, b2db_ref,
                  att_ref, attw_ref, heads_ref):
    L, E = x_ref.shape            # L = attended axis (dim0), E = embed dim
    H = wvo_ref.shape[0]          # num heads
    d = wqk_ref.shape[2]          # head dim
    scale = 1.0 / float(np.sqrt(d))

    x = x_ref[...]                                          # (L, E)

    acc = jnp.zeros((L, E), jnp.float32)
    attn_sum = jnp.zeros((L, L), jnp.float32)
    for h in range(H):            # static unroll over H=4 heads (tiny)
        qh = jnp.dot(x, wqk_ref[h], preferred_element_type=jnp.float32) + bqk_ref[h]
        kh = jnp.dot(x, wqk_ref[H + h], preferred_element_type=jnp.float32) + bqk_ref[H + h]
        s = jax.lax.dot_general(qh, kh, (((1,), (1,)), ((), ())),
                                preferred_element_type=jnp.float32) * scale
        s = s - jnp.max(s, axis=-1, keepdims=True)
        e = jnp.exp(s)
        p = e / jnp.sum(e, axis=-1, keepdims=True)          # (L, L)
        attn_sum = attn_sum + p
        # V and out_proj folded in the wrapper: Wvo_h = Wv_h @ Wout_h
        vo = jnp.dot(x, wvo_ref[h], preferred_element_type=jnp.float32) + bvo_ref[h]
        acc = acc + jnp.dot(p, vo, preferred_element_type=jnp.float32)

    attended = acc + bout_ref[...]                          # add out_proj bias once
    att_ref[...] = attended
    attw_ref[...] = attn_sum * (1.0 / H)                    # head-averaged weights

    # ---- the four MLP heads, merged into 4 lane-dense matmuls ----
    relu = lambda t: jnp.maximum(t, 0.0)
    # TODO(synk): nn.Dropout(0.1) treated as identity (eval/inference semantics).
    h_all = relu(jnp.dot(attended, w1_ref[...],
                         preferred_element_type=jnp.float32) + b1_ref[...])      # (L, 128)
    fa2 = relu(jnp.dot(h_all, w2fa_ref[...],
                       preferred_element_type=jnp.float32) + b2fa_ref[...])      # (L, 96)
    fa3 = jnp.dot(fa2, w3fa_ref[...],
                  preferred_element_type=jnp.float32) + b3fa_ref[...]            # (L, 2)
    db = jnp.dot(h_all, w2db_ref[...],
                 preferred_element_type=jnp.float32) + b2db_ref[...]             # (L, 3)

    heads_ref[:, 0:1] = jax.nn.sigmoid(fa3[:, 0:1])         # focus
    heads_ref[:, 1:2] = fa3[:, 1:2]                         # attention analysis
    dl = db[:, 0:2]
    dl = dl - jnp.max(dl, axis=-1, keepdims=True)
    de = jnp.exp(dl)
    heads_ref[:, 2:4] = de / jnp.sum(de, axis=-1, keepdims=True)   # distraction softmax
    heads_ref[:, 4:5] = db[:, 2:3]                          # break predictor


# ----------------------------------------------------------------------------
# Host-side weight packing (pure jnp, done once)
# ----------------------------------------------------------------------------
def pack_params(p):
    E, H = INPUT_DIM, NUM_HEADS
    d = E // H
    Hd, A = HIDDEN_DIM, ANALYZER_DIM

    w_in, b_in = p['w_in'], p['b_in']                       # (E, 3E), (1, 3E)
    wq = w_in[:, :E].reshape(E, H, d).transpose(1, 0, 2)    # (H, E, d)
    wk = w_in[:, E:2 * E].reshape(E, H, d).transpose(1, 0, 2)
    wv = w_in[:, 2 * E:].reshape(E, H, d).transpose(1, 0, 2)
    b3 = b_in.reshape(3, H, d)                              # (3, H, d)
    wout_h = p['w_out'].reshape(H, d, E)                    # per-head rows of out_proj
    # Fold V projection and output projection: (P @ V) @ Wout == P @ (V @ Wout)
    wvo = jnp.einsum('hed,hdf->hef', wv, wout_h)            # (H, E, E)
    bvo = jnp.einsum('hd,hdf->hf', b3[2], wout_h)[:, None, :]   # (H, 1, E)
    wqk = jnp.concatenate([wq, wk], axis=0)                 # (2H, E, d)
    bqk = jnp.concatenate([b3[0][:, None, :], b3[1][:, None, :]], axis=0)  # (2H, 1, d)

    # Heads first layer: one (E, 4*Hd) = (32, 128) lane-dense matmul
    W1 = jnp.concatenate([p['fw1'], p['aw1'], p['dw1'], p['bw1']], axis=1)
    b1 = jnp.concatenate([p['fb1'], p['ab1'], p['db1'], p['bb1']], axis=1)

    # Focus layer-2 + analyzer layer-2, block-structured into (128, 96)
    W2fa = jnp.zeros((4 * Hd, Hd + A), jnp.float32)
    W2fa = W2fa.at[0:Hd, 0:Hd].set(p['fw2'])
    W2fa = W2fa.at[Hd:2 * Hd, Hd:Hd + A].set(p['aw2'])
    b2fa = jnp.concatenate([p['fb2'], p['ab2']], axis=1)    # (1, 96)

    # Focus layer-3 + analyzer layer-3, block-structured into (96, 2)
    W3fa = jnp.zeros((Hd + A, 2), jnp.float32)
    W3fa = W3fa.at[0:Hd, 0:1].set(p['fw3'])
    W3fa = W3fa.at[Hd:Hd + A, 1:2].set(p['aw3'])
    b3fa = jnp.concatenate([p['fb3'], p['ab3']], axis=1)    # (1, 2)

    # Distraction layer-2 (2 cols) + break layer-2 (1 col), block-structured (128, 3)
    W2db = jnp.zeros((4 * Hd, 3), jnp.float32)
    W2db = W2db.at[2 * Hd:3 * Hd, 0:2].set(p['dw2'])
    W2db = W2db.at[3 * Hd:4 * Hd, 2:3].set(p['bw2'])
    b2db = jnp.concatenate([p['db2'], p['bb2']], axis=1)    # (1, 3)

    return dict(wqk=wqk, bqk=bqk, wvo=wvo, bvo=bvo, bout=p['b_out'],
                W1=W1, b1=b1, W2fa=W2fa, b2fa=b2fa, W3fa=W3fa, b3fa=b3fa,
                W2db=W2db, b2db=b2db)


# ----------------------------------------------------------------------------
# Wrapper
# ----------------------------------------------------------------------------
def focus_attention_predictor(learning_sequence, user_state, params):
    """Pallas implementation of FocusAttentionPredictor.forward."""
    del user_state  # unused by the PyTorch forward as well
    L, Nb, E = learning_sequence.shape
    pk = pack_params(params)

    # MHA batch axis (dim1) leading so each grid block is a full (L, E) slab.
    xT = jnp.transpose(learning_sequence, (1, 0, 2)).astype(jnp.float32)   # (Nb, L, E)

    def const_spec(arr):
        n = arr.ndim
        return pl.BlockSpec(arr.shape, lambda b, _n=n: (0,) * _n)

    weight_args = (pk['wqk'], pk['bqk'], pk['wvo'], pk['bvo'], pk['bout'],
                   pk['W1'], pk['b1'], pk['W2fa'], pk['b2fa'],
                   pk['W3fa'], pk['b3fa'], pk['W2db'], pk['b2db'])

    in_specs = [pl.BlockSpec((None, L, E), lambda b: (b, 0, 0))]
    in_specs += [const_spec(a) for a in weight_args]

    out_shapes = (jax.ShapeDtypeStruct((Nb, L, E), jnp.float32),
                  jax.ShapeDtypeStruct((Nb, L, L), jnp.float32),
                  jax.ShapeDtypeStruct((Nb, L, HEADS_OUT), jnp.float32))
    out_specs = (pl.BlockSpec((None, L, E), lambda b: (b, 0, 0)),
                 pl.BlockSpec((None, L, L), lambda b: (b, 0, 0)),
                 pl.BlockSpec((None, L, HEADS_OUT), lambda b: (b, 0, 0)))

    attended_t, attn_w, heads_t = pl.pallas_call(
        _fused_kernel,
        grid=(Nb,),
        out_shape=out_shapes,
        in_specs=in_specs,
        out_specs=out_specs,
        compiler_params=pltpu.CompilerParams(
            dimension_semantics=("parallel",)),
    )(xT, *weight_args)

    attended = jnp.transpose(attended_t, (1, 0, 2))          # (L, Nb, E)
    heads = jnp.transpose(heads_t, (1, 0, 2))                # (L, Nb, 5)
    return {
        'focus_predictions': heads[..., 0:1],
        'attention_weights': attn_w,
        'attention_analysis': heads[..., 1:2],
        'distraction_predictions': heads[..., 2:4],
        'break_predictions': heads[..., 4:5],
        'attended_sequence': attended,
    }


# ----------------------------------------------------------------------------
# Deterministic synthetic parameters
# ----------------------------------------------------------------------------
def make_params(key):
    keys = jax.random.split(key, 32)
    it = iter(keys)

    def w(shape, scale=0.2):
        return (scale * jax.random.normal(next(it), shape)).astype(jnp.float32)

    E, Hd, A = INPUT_DIM, HIDDEN_DIM, ANALYZER_DIM
    return {
        # MultiheadAttention (weights stored pre-transposed: (in, out))
        'w_in': w((E, 3 * E)), 'b_in': w((1, 3 * E), 0.05),
        'w_out': w((E, E)), 'b_out': w((1, E), 0.05),
        # focus_predictor
        'fw1': w((E, Hd)), 'fb1': w((1, Hd), 0.05),
        'fw2': w((Hd, Hd)), 'fb2': w((1, Hd), 0.05),
        'fw3': w((Hd, 1)), 'fb3': w((1, 1), 0.05),
        # attention_analyzer
        'aw1': w((Hd, Hd)), 'ab1': w((1, Hd), 0.05),
        'aw2': w((Hd, A)), 'ab2': w((1, A), 0.05),
        'aw3': w((A, 1)), 'ab3': w((1, 1), 0.05),
        # distraction_detector
        'dw1': w((Hd, Hd)), 'db1': w((1, Hd), 0.05),
        'dw2': w((Hd, 2)), 'db2': w((1, 2), 0.05),
        # break_predictor
        'bw1': w((Hd, Hd)), 'bb1': w((1, Hd), 0.05),
        'bw2': w((Hd, 1)), 'bb2': w((1, 1), 0.05),
    }


# ----------------------------------------------------------------------------
# Pure-JAX reference (PyTorch semantics, un-folded math) for verification
# ----------------------------------------------------------------------------
def ref_forward(x, p):
    L, Nb, E = x.shape
    H, d = NUM_HEADS, E // NUM_HEADS
    qkv = x @ p['w_in'] + p['b_in'][0]
    q, k, v = qkv[..., :E], qkv[..., E:2 * E], qkv[..., 2 * E:]

    def split(t):  # (L, Nb, E) -> (Nb, H, L, d)
        return t.reshape(L, Nb, H, d).transpose(1, 2, 0, 3)

    qh, kh, vh = split(q), split(k), split(v)
    s = jnp.einsum('bhld,bhmd->bhlm', qh, kh) / np.sqrt(d)
    pw = jax.nn.softmax(s, axis=-1)
    o = jnp.einsum('bhlm,bhmd->bhld', pw, vh)
    o = o.transpose(2, 0, 1, 3).reshape(L, Nb, E)
    attended = o @ p['w_out'] + p['b_out'][0]
    attn_w = pw.mean(axis=1)

    relu = jax.nn.relu
    h = relu(attended @ p['fw1'] + p['fb1'][0])
    h = relu(h @ p['fw2'] + p['fb2'][0])
    focus = jax.nn.sigmoid(h @ p['fw3'] + p['fb3'][0])

    a = relu(attended @ p['aw1'] + p['ab1'][0])
    a = relu(a @ p['aw2'] + p['ab2'][0])
    analysis = a @ p['aw3'] + p['ab3'][0]

    dd = relu(attended @ p['dw1'] + p['db1'][0])
    distraction = jax.nn.softmax(dd @ p['dw2'] + p['db2'][0], axis=-1)

    bb = relu(attended @ p['bw1'] + p['bb1'][0])
    brk = bb @ p['bw2'] + p['bb2'][0]

    return {
        'focus_predictions': focus,
        'attention_weights': attn_w,
        'attention_analysis': analysis,
        'distraction_predictions': distraction,
        'break_predictions': brk,
        'attended_sequence': attended,
    }


if __name__ == "__main__":
    key = jax.random.PRNGKey(0)
    kp, kx, ku = jax.random.split(key, 3)
    params = make_params(kp)

    batch, seq = 2, 8
    learning_sequence = jax.random.normal(kx, (batch, seq, INPUT_DIM), dtype=jnp.float32)
    user_state = jax.random.normal(ku, (batch, INPUT_DIM), dtype=jnp.float32)

    out = focus_attention_predictor(learning_sequence, user_state, params)
    out = jax.block_until_ready(out)

    ref = ref_forward(learning_sequence, params)
    for name in ref:
        np.testing.assert_allclose(np.asarray(out[name]), np.asarray(ref[name]),
                                   atol=1e-4, rtol=1e-4)

    print("KERNEL_OK")
</pallas_src>

<mosaic_0001>
module attributes {stable_mosaic.version = 11 : i64} {
  func.func @_fused_kernel(%arg0: i32, %arg1: memref<1x2x32xf32, #tpu.memory_space<vmem>>, %arg2: memref<8x32x8xf32, #tpu.memory_space<vmem>>, %arg3: memref<8x1x8xf32, #tpu.memory_space<vmem>>, %arg4: memref<4x32x32xf32, #tpu.memory_space<vmem>>, %arg5: memref<4x1x32xf32, #tpu.memory_space<vmem>>, %arg6: memref<1x32xf32, #tpu.memory_space<vmem>>, %arg7: memref<32x128xf32, #tpu.memory_space<vmem>>, %arg8: memref<1x128xf32, #tpu.memory_space<vmem>>, %arg9: memref<128x96xf32, #tpu.memory_space<vmem>>, %arg10: memref<1x96xf32, #tpu.memory_space<vmem>>, %arg11: memref<96x2xf32, #tpu.memory_space<vmem>>, %arg12: memref<1x2xf32, #tpu.memory_space<vmem>>, %arg13: memref<128x3xf32, #tpu.memory_space<vmem>>, %arg14: memref<1x3xf32, #tpu.memory_space<vmem>>, %arg15: memref<1x2x32xf32, #tpu.memory_space<vmem>>, %arg16: memref<1x2x2xf32, #tpu.memory_space<vmem>>, %arg17: memref<1x2x5xf32, #tpu.memory_space<vmem>>) attributes {dimension_semantics = [#tpu.dimension_semantics<parallel>], iteration_bounds = array<i64: 8>, scalar_prefetch = 0 : i64, scratch_operands = 0 : i64, tpu.core_type = #tpu.core_type<tc>, window_params = [{transform_indices = @transform_0, window_bounds = array<i64: 1, 2, 32>}, {pipeline_mode = #tpu.pipeline_mode<synchronous>, transform_indices = @transform_1, window_bounds = array<i64: 8, 32, 8>}, {pipeline_mode = #tpu.pipeline_mode<synchronous>, transform_indices = @transform_2, window_bounds = array<i64: 8, 1, 8>}, {pipeline_mode = #tpu.pipeline_mode<synchronous>, transform_indices = @transform_3, window_bounds = array<i64: 4, 32, 32>}, {pipeline_mode = #tpu.pipeline_mode<synchronous>, transform_indices = @transform_4, window_bounds = array<i64: 4, 1, 32>}, {pipeline_mode = #tpu.pipeline_mode<synchronous>, transform_indices = @transform_5, window_bounds = array<i64: 1, 32>}, {pipeline_mode = #tpu.pipeline_mode<synchronous>, transform_indices = @transform_6, window_bounds = array<i64: 32, 128>}, {pipeline_mode = #tpu.pipeline_mode<synchronous>, transform_indices = @transform_7, window_bounds = array<i64: 1, 128>}, {pipeline_mode = #tpu.pipeline_mode<synchronous>, transform_indices = @transform_8, window_bounds = array<i64: 128, 96>}, {pipeline_mode = #tpu.pipeline_mode<synchronous>, transform_indices = @transform_9, window_bounds = array<i64: 1, 96>}, {pipeline_mode = #tpu.pipeline_mode<synchronous>, transform_indices = @transform_10, window_bounds = array<i64: 96, 2>}, {pipeline_mode = #tpu.pipeline_mode<synchronous>, transform_indices = @transform_11, window_bounds = array<i64: 1, 2>}, {pipeline_mode = #tpu.pipeline_mode<synchronous>, transform_indices = @transform_12, window_bounds = array<i64: 128, 3>}, {pipeline_mode = #tpu.pipeline_mode<synchronous>, transform_indices = @transform_13, window_bounds = array<i64: 1, 3>}, {transform_indices = @transform_14, window_bounds = array<i64: 1, 2, 32>}, {transform_indices = @transform_15, window_bounds = array<i64: 1, 2, 2>}, {transform_indices = @transform_16, window_bounds = array<i64: 1, 2, 5>}]} {
    %c0 = arith.constant 0 : index
    %c0_0 = arith.constant 0 : index
    %c0_1 = arith.constant 0 : index
    %0 = vector.load %arg1[%c0, %c0_0, %c0_1] : memref<1x2x32xf32, #tpu.memory_space<vmem>>, vector<1x2x32xf32>
    %1 = vector.shape_cast %0 : vector<1x2x32xf32> to vector<2x32xf32>
    %cst = arith.constant 0.000000e+00 : f32
    %2 = vector.broadcast %cst : f32 to vector<2x32xf32>
    %cst_2 = arith.constant 0.000000e+00 : f32
    %3 = vector.broadcast %cst_2 : f32 to vector<2x2xf32>
    %c0_3 = arith.constant 0 : index
    %c0_4 = arith.constant 0 : index
    %c0_5 = arith.constant 0 : index
    %4 = vector.load %arg2[%c0_3, %c0_4, %c0_5] : memref<8x32x8xf32, #tpu.memory_space<vmem>>, vector<1x32x8xf32>
    %5 = vector.shape_cast %4 : vector<1x32x8xf32> to vector<32x8xf32>
    %cst_6 = arith.constant dense<0.000000e+00> : vector<2x8xf32>
    %6 = tpu.matmul %1, %5, %cst_6 {dimension_numbers = #tpu.dot_dimension_numbers<[1], [0], [0], [1], [0, 0, 1, 1], [], []>} : vector<2x32xf32>, vector<32x8xf32>, vector<2x8xf32> -> vector<2x8xf32>
    %c0_7 = arith.constant 0 : index
    %c0_8 = arith.constant 0 : index
    %c0_9 = arith.constant 0 : index
    %7 = vector.load %arg3[%c0_7, %c0_8, %c0_9] : memref<8x1x8xf32, #tpu.memory_space<vmem>>, vector<1x1x8xf32>
    %8 = vector.shape_cast %7 : vector<1x1x8xf32> to vector<1x8xf32>
    %9 = vector.broadcast %8 : vector<1x8xf32> to vector<2x8xf32>
    %10 = arith.addf %6, %9 : vector<2x8xf32>
    %c4 = arith.constant 4 : index
    %c0_10 = arith.constant 0 : index
    %c0_11 = arith.constant 0 : index
    %11 = vector.load %arg2[%c4, %c0_10, %c0_11] : memref<8x32x8xf32, #tpu.memory_space<vmem>>, vector<1x32x8xf32>
    %12 = vector.shape_cast %11 : vector<1x32x8xf32> to vector<32x8xf32>
    %cst_12 = arith.constant dense<0.000000e+00> : vector<2x8xf32>
    %13 = tpu.matmul %1, %12, %cst_12 {dimension_numbers = #tpu.dot_dimension_numbers<[1], [0], [0], [1], [0, 0, 1, 1], [], []>} : vector<2x32xf32>, vector<32x8xf32>, vector<2x8xf32> -> vector<2x8xf32>
    %c4_13 = arith.constant 4 : index
    %c0_14 = arith.constant 0 : index
    %c0_15 = arith.constant 0 : index
    %14 = vector.load %arg3[%c4_13, %c0_14, %c0_15] : memref<8x1x8xf32, #tpu.memory_space<vmem>>, vector<1x1x8xf32>
    %15 = vector.shape_cast %14 : vector<1x1x8xf32> to vector<1x8xf32>
    %16 = vector.broadcast %15 : vector<1x8xf32> to vector<2x8xf32>
    %17 = arith.addf %13, %16 : vector<2x8xf32>
    %cst_16 = arith.constant dense<0.000000e+00> : vector<2x2xf32>
    %18 = tpu.matmul %10, %17, %cst_16 {dimension_numbers = #tpu.dot_dimension_numbers<[1], [1], [0], [0], [0, 0, 1, 0], [], []>} : vector<2x8xf32>, vector<2x8xf32>, vector<2x2xf32> -> vector<2x2xf32>
    %cst_17 = arith.constant 0.353553385 : f32
    %19 = vector.broadcast %cst_17 : f32 to vector<2x2xf32>
    %20 = arith.mulf %18, %19 : vector<2x2xf32>
    %cst_18 = arith.constant dense<0xFF800000> : vector<2xf32>
    %21 = vector.multi_reduction <maximumf>, %20, %cst_18 [1] : vector<2x2xf32> to vector<2xf32>
    %22 = vector.shape_cast %21 : vector<2xf32> to vector<2x1xf32>
    %23 = vector.broadcast %22 : vector<2x1xf32> to vector<2x2xf32>
    %24 = arith.subf %20, %23 : vector<2x2xf32>
    %25 = math.exp %24 : vector<2x2xf32>
    %cst_19 = arith.constant dense<0.000000e+00> : vector<2xf32>
    %26 = vector.multi_reduction <add>, %25, %cst_19 [1] : vector<2x2xf32> to vector<2xf32>
    %27 = vector.shape_cast %26 : vector<2xf32> to vector<2x1xf32>
    %28 = vector.broadcast %27 : vector<2x1xf32> to vector<2x2xf32>
    %29 = arith.divf %25, %28 : vector<2x2xf32>
    %30 = arith.addf %3, %29 : vector<2x2xf32>
    %c0_20 = arith.constant 0 : index
    %c0_21 = arith.constant 0 : index
    %c0_22 = arith.constant 0 : index
    %31 = vector.load %arg4[%c0_20, %c0_21, %c0_22] : memref<4x32x32xf32, #tpu.memory_space<vmem>>, vector<1x32x32xf32>
    %32 = vector.shape_cast %31 : vector<1x32x32xf32> to vector<32x32xf32>
    %cst_23 = arith.constant dense<0.000000e+00> : vector<2x32xf32>
    %33 = tpu.matmul %1, %32, %cst_23 {dimension_numbers = #tpu.dot_dimension_numbers<[1], [0], [0], [1], [0, 0, 1, 1], [], []>} : vector<2x32xf32>, vector<32x32xf32>, vector<2x32xf32> -> vector<2x32xf32>
    %c0_24 = arith.constant 0 : index
    %c0_25 = arith.constant 0 : index
    %c0_26 = arith.constant 0 : index
    %34 = vector.load %arg5[%c0_24, %c0_25, %c0_26] : memref<4x1x32xf32, #tpu.memory_space<vmem>>, vector<1x1x32xf32>
    %35 = vector.shape_cast %34 : vector<1x1x32xf32> to vector<1x32xf32>
    %36 = vector.broadcast %35 : vector<1x32xf32> to vector<2x32xf32>
    %37 = arith.addf %33, %36 : vector<2x32xf32>
    %cst_27 = arith.constant dense<0.000000e+00> : vector<2x32xf32>
    %38 = tpu.matmul %29, %37, %cst_27 {dimension_numbers = #tpu.dot_dimension_numbers<[1], [0], [0], [1], [0, 0, 1, 1], [], []>} : vector<2x2xf32>, vector<2x32xf32>, vector<2x32xf32> -> vector<2x32xf32>
    %39 = arith.addf %2, %38 : vector<2x32xf32>
    %c1 = arith.constant 1 : index
    %c0_28 = arith.constant 0 : index
    %c0_29 = arith.constant 0 : index
    %40 = vector.load %arg2[%c1, %c0_28, %c0_29] : memref<8x32x8xf32, #tpu.memory_space<vmem>>, vector<1x32x8xf32>
    %41 = vector.shape_cast %40 : vector<1x32x8xf32> to vector<32x8xf32>
    %cst_30 = arith.constant dense<0.000000e+00> : vector<2x8xf32>
    %42 = tpu.matmul %1, %41, %cst_30 {dimension_numbers = #tpu.dot_dimension_numbers<[1], [0], [0], [1], [0, 0, 1, 1], [], []>} : vector<2x32xf32>, vector<32x8xf32>, vector<2x8xf32> -> vector<2x8xf32>
    %c1_31 = arith.constant 1 : index
    %c0_32 = arith.constant 0 : index
    %c0_33 = arith.constant 0 : index
    %43 = vector.load %arg3[%c1_31, %c0_32, %c0_33] : memref<8x1x8xf32, #tpu.memory_space<vmem>>, vector<1x1x8xf32>
    %44 = vector.shape_cast %43 : vector<1x1x8xf32> to vector<1x8xf32>
    %45 = vector.broadcast %44 : vector<1x8xf32> to vector<2x8xf32>
    %46 = arith.addf %42, %45 : vector<2x8xf32>
    %c5 = arith.constant 5 : index
    %c0_34 = arith.constant 0 : index
    %c0_35 = arith.constant 0 : index
    %47 = vector.load %arg2[%c5, %c0_34, %c0_35] : memref<8x32x8xf32, #tpu.memory_space<vmem>>, vector<1x32x8xf32>
    %48 = vector.shape_cast %47 : vector<1x32x8xf32> to vector<32x8xf32>
    %cst_36 = arith.constant dense<0.000000e+00> : vector<2x8xf32>
    %49 = tpu.matmul %1, %48, %cst_36 {dimension_numbers = #tpu.dot_dimension_numbers<[1], [0], [0], [1], [0, 0, 1, 1], [], []>} : vector<2x32xf32>, vector<32x8xf32>, vector<2x8xf32> -> vector<2x8xf32>
    %c5_37 = arith.constant 5 : index
    %c0_38 = arith.constant 0 : index
    %c0_39 = arith.constant 0 : index
    %50 = vector.load %arg3[%c5_37, %c0_38, %c0_39] : memref<8x1x8xf32, #tpu.memory_space<vmem>>, vector<1x1x8xf32>
    %51 = vector.shape_cast %50 : vector<1x1x8xf32> to vector<1x8xf32>
    %52 = vector.broadcast %51 : vector<1x8xf32> to vector<2x8xf32>
    %53 = arith.addf %49, %52 : vector<2x8xf32>
    %cst_40 = arith.constant dense<0.000000e+00> : vector<2x2xf32>
    %54 = tpu.matmul %46, %53, %cst_40 {dimension_numbers = #tpu.dot_dimension_numbers<[1], [1], [0], [0], [0, 0, 1, 0], [], []>} : vector<2x8xf32>, vector<2x8xf32>, vector<2x2xf32> -> vector<2x2xf32>
    %cst_41 = arith.constant 0.353553385 : f32
    %55 = vector.broadcast %cst_41 : f32 to vector<2x2xf32>
    %56 = arith.mulf %54, %55 : vector<2x2xf32>
    %cst_42 = arith.constant dense<0xFF800000> : vector<2xf32>
    %57 = vector.multi_reduction <maximumf>, %56, %cst_42 [1] : vector<2x2xf32> to vector<2xf32>
    %58 = vector.shape_cast %57 : vector<2xf32> to vector<2x1xf32>
    %59 = vector.broadcast %58 : vector<2x1xf32> to vector<2x2xf32>
    %60 = arith.subf %56, %59 : vector<2x2xf32>
    %61 = math.exp %60 : vector<2x2xf32>
    %cst_43 = arith.constant dense<0.000000e+00> : vector<2xf32>
    %62 = vector.multi_reduction <add>, %61, %cst_43 [1] : vector<2x2xf32> to vector<2xf32>
    %63 = vector.shape_cast %62 : vector<2xf32> to vector<2x1xf32>
    %64 = vector.broadcast %63 : vector<2x1xf32> to vector<2x2xf32>
    %65 = arith.divf %61, %64 : vector<2x2xf32>
    %66 = arith.addf %30, %65 : vector<2x2xf32>
    %c1_44 = arith.constant 1 : index
    %c0_45 = arith.constant 0 : index
    %c0_46 = arith.constant 0 : index
    %67 = vector.load %arg4[%c1_44, %c0_45, %c0_46] : memref<4x32x32xf32, #tpu.memory_space<vmem>>, vector<1x32x32xf32>
    %68 = vector.shape_cast %67 : vector<1x32x32xf32> to vector<32x32xf32>
    %cst_47 = arith.constant dense<0.000000e+00> : vector<2x32xf32>
    %69 = tpu.matmul %1, %68, %cst_47 {dimension_numbers = #tpu.dot_dimension_numbers<[1], [0], [0], [1], [0, 0, 1, 1], [], []>} : vector<2x32xf32>, vector<32x32xf32>, vector<2x32xf32> -> vector<2x32xf32>
    %c1_48 = arith.constant 1 : index
    %c0_49 = arith.constant 0 : index
    %c0_50 = arith.constant 0 : index
    %70 = vector.load %arg5[%c1_48, %c0_49, %c0_50] : memref<4x1x32xf32, #tpu.memory_space<vmem>>, vector<1x1x32xf32>
    %71 = vector.shape_cast %70 : vector<1x1x32xf32> to vector<1x32xf32>
    %72 = vector.broadcast %71 : vector<1x32xf32> to vector<2x32xf32>
    %73 = arith.addf %69, %72 : vector<2x32xf32>
    %cst_51 = arith.constant dense<0.000000e+00> : vector<2x32xf32>
    %74 = tpu.matmul %65, %73, %cst_51 {dimension_numbers = #tpu.dot_dimension_numbers<[1], [0], [0], [1], [0, 0, 1, 1], [], []>} : vector<2x2xf32>, vector<2x32xf32>, vector<2x32xf32> -> vector<2x32xf32>
    %75 = arith.addf %39, %74 : vector<2x32xf32>
    %c2 = arith.constant 2 : index
    %c0_52 = arith.constant 0 : index
    %c0_53 = arith.constant 0 : index
    %76 = vector.load %arg2[%c2, %c0_52, %c0_53] : memref<8x32x8xf32, #tpu.memory_space<vmem>>, vector<1x32x8xf32>
    %77 = vector.shape_cast %76 : vector<1x32x8xf32> to vector<32x8xf32>
    %cst_54 = arith.constant dense<0.000000e+00> : vector<2x8xf32>
    %78 = tpu.matmul %1, %77, %cst_54 {dimension_numbers = #tpu.dot_dimension_numbers<[1], [0], [0], [1], [0, 0, 1, 1], [], []>} : vector<2x32xf32>, vector<32x8xf32>, vector<2x8xf32> -> vector<2x8xf32>
    %c2_55 = arith.constant 2 : index
    %c0_56 = arith.constant 0 : index
    %c0_57 = arith.constant 0 : index
    %79 = vector.load %arg3[%c2_55, %c0_56, %c0_57] : memref<8x1x8xf32, #tpu.memory_space<vmem>>, vector<1x1x8xf32>
    %80 = vector.shape_cast %79 : vector<1x1x8xf32> to vector<1x8xf32>
    %81 = vector.broadcast %80 : vector<1x8xf32> to vector<2x8xf32>
    %82 = arith.addf %78, %81 : vector<2x8xf32>
    %c6 = arith.constant 6 : index
    %c0_58 = arith.constant 0 : index
    %c0_59 = arith.constant 0 : index
    %83 = vector.load %arg2[%c6, %c0_58, %c0_59] : memref<8x32x8xf32, #tpu.memory_space<vmem>>, vector<1x32x8xf32>
    %84 = vector.shape_cast %83 : vector<1x32x8xf32> to vector<32x8xf32>
    %cst_60 = arith.constant dense<0.000000e+00> : vector<2x8xf32>
    %85 = tpu.matmul %1, %84, %cst_60 {dimension_numbers = #tpu.dot_dimension_numbers<[1], [0], [0], [1], [0, 0, 1, 1], [], []>} : vector<2x32xf32>, vector<32x8xf32>, vector<2x8xf32> -> vector<2x8xf32>
    %c6_61 = arith.constant 6 : index
    %c0_62 = arith.constant 0 : index
    %c0_63 = arith.constant 0 : index
    %86 = vector.load %arg3[%c6_61, %c0_62, %c0_63] : memref<8x1x8xf32, #tpu.memory_space<vmem>>, vector<1x1x8xf32>
    %87 = vector.shape_cast %86 : vector<1x1x8xf32> to vector<1x8xf32>
    %88 = vector.broadcast %87 : vector<1x8xf32> to vector<2x8xf32>
    %89 = arith.addf %85, %88 : vector<2x8xf32>
    %cst_64 = arith.constant dense<0.000000e+00> : vector<2x2xf32>
    %90 = tpu.matmul %82, %89, %cst_64 {dimension_numbers = #tpu.dot_dimension_numbers<[1], [1], [0], [0], [0, 0, 1, 0], [], []>} : vector<2x8xf32>, vector<2x8xf32>, vector<2x2xf32> -> vector<2x2xf32>
    %cst_65 = arith.constant 0.353553385 : f32
    %91 = vector.broadcast %cst_65 : f32 to vector<2x2xf32>
    %92 = arith.mulf %90, %91 : vector<2x2xf32>
    %cst_66 = arith.constant dense<0xFF800000> : vector<2xf32>
    %93 = vector.multi_reduction <maximumf>, %92, %cst_66 [1] : vector<2x2xf32> to vector<2xf32>
    %94 = vector.shape_cast %93 : vector<2xf32> to vector<2x1xf32>
    %95 = vector.broadcast %94 : vector<2x1xf32> to vector<2x2xf32>
    %96 = arith.subf %92, %95 : vector<2x2xf32>
    %97 = math.exp %96 : vector<2x2xf32>
    %cst_67 = arith.constant dense<0.000000e+00> : vector<2xf32>
    %98 = vector.multi_reduction <add>, %97, %cst_67 [1] : vector<2x2xf32> to vector<2xf32>
    %99 = vector.shape_cast %98 : vector<2xf32> to vector<2x1xf32>
    %100 = vector.broadcast %99 : vector<2x1xf32> to vector<2x2xf32>
    %101 = arith.divf %97, %100 : vector<2x2xf32>
    %102 = arith.addf %66, %101 : vector<2x2xf32>
    %c2_68 = arith.constant 2 : index
    %c0_69 = arith.constant 0 : index
    %c0_70 = arith.constant 0 : index
    %103 = vector.load %arg4[%c2_68, %c0_69, %c0_70] : memref<4x32x32xf32, #tpu.memory_space<vmem>>, vector<1x32x32xf32>
    %104 = vector.shape_cast %103 : vector<1x32x32xf32> to vector<32x32xf32>
    %cst_71 = arith.constant dense<0.000000e+00> : vector<2x32xf32>
    %105 = tpu.matmul %1, %104, %cst_71 {dimension_numbers = #tpu.dot_dimension_numbers<[1], [0], [0], [1], [0, 0, 1, 1], [], []>} : vector<2x32xf32>, vector<32x32xf32>, vector<2x32xf32> -> vector<2x32xf32>
    %c2_72 = arith.constant 2 : index
    %c0_73 = arith.constant 0 : index
    %c0_74 = arith.constant 0 : index
    %106 = vector.load %arg5[%c2_72, %c0_73, %c0_74] : memref<4x1x32xf32, #tpu.memory_space<vmem>>, vector<1x1x32xf32>
    %107 = vector.shape_cast %106 : vector<1x1x32xf32> to vector<1x32xf32>
    %108 = vector.broadcast %107 : vector<1x32xf32> to vector<2x32xf32>
    %109 = arith.addf %105, %108 : vector<2x32xf32>
    %cst_75 = arith.constant dense<0.000000e+00> : vector<2x32xf32>
    %110 = tpu.matmul %101, %109, %cst_75 {dimension_numbers = #tpu.dot_dimension_numbers<[1], [0], [0], [1], [0, 0, 1, 1], [], []>} : vector<2x2xf32>, vector<2x32xf32>, vector<2x32xf32> -> vector<2x32xf32>
    %111 = arith.addf %75, %110 : vector<2x32xf32>
    %c3 = arith.constant 3 : index
    %c0_76 = arith.constant 0 : index
    %c0_77 = arith.constant 0 : index
    %112 = vector.load %arg2[%c3, %c0_76, %c0_77] : memref<8x32x8xf32, #tpu.memory_space<vmem>>, vector<1x32x8xf32>
    %113 = vector.shape_cast %112 : vector<1x32x8xf32> to vector<32x8xf32>
    %cst_78 = arith.constant dense<0.000000e+00> : vector<2x8xf32>
    %114 = tpu.matmul %1, %113, %cst_78 {dimension_numbers = #tpu.dot_dimension_numbers<[1], [0], [0], [1], [0, 0, 1, 1], [], []>} : vector<2x32xf32>, vector<32x8xf32>, vector<2x8xf32> -> vector<2x8xf32>
    %c3_79 = arith.constant 3 : index
    %c0_80 = arith.constant 0 : index
    %c0_81 = arith.constant 0 : index
    %115 = vector.load %arg3[%c3_79, %c0_80, %c0_81] : memref<8x1x8xf32, #tpu.memory_space<vmem>>, vector<1x1x8xf32>
    %116 = vector.shape_cast %115 : vector<1x1x8xf32> to vector<1x8xf32>
    %117 = vector.broadcast %116 : vector<1x8xf32> to vector<2x8xf32>
    %118 = arith.addf %114, %117 : vector<2x8xf32>
    %c7 = arith.constant 7 : index
    %c0_82 = arith.constant 0 : index
    %c0_83 = arith.constant 0 : index
    %119 = vector.load %arg2[%c7, %c0_82, %c0_83] : memref<8x32x8xf32, #tpu.memory_space<vmem>>, vector<1x32x8xf32>
    %120 = vector.shape_cast %119 : vector<1x32x8xf32> to vector<32x8xf32>
    %cst_84 = arith.constant dense<0.000000e+00> : vector<2x8xf32>
    %121 = tpu.matmul %1, %120, %cst_84 {dimension_numbers = #tpu.dot_dimension_numbers<[1], [0], [0], [1], [0, 0, 1, 1], [], []>} : vector<2x32xf32>, vector<32x8xf32>, vector<2x8xf32> -> vector<2x8xf32>
    %c7_85 = arith.constant 7 : index
    %c0_86 = arith.constant 0 : index
    %c0_87 = arith.constant 0 : index
    %122 = vector.load %arg3[%c7_85, %c0_86, %c0_87] : memref<8x1x8xf32, #tpu.memory_space<vmem>>, vector<1x1x8xf32>
    %123 = vector.shape_cast %122 : vector<1x1x8xf32> to vector<1x8xf32>
    %124 = vector.broadcast %123 : vector<1x8xf32> to vector<2x8xf32>
    %125 = arith.addf %121, %124 : vector<2x8xf32>
    %cst_88 = arith.constant dense<0.000000e+00> : vector<2x2xf32>
    %126 = tpu.matmul %118, %125, %cst_88 {dimension_numbers = #tpu.dot_dimension_numbers<[1], [1], [0], [0], [0, 0, 1, 0], [], []>} : vector<2x8xf32>, vector<2x8xf32>, vector<2x2xf32> -> vector<2x2xf32>
    %cst_89 = arith.constant 0.353553385 : f32
    %127 = vector.broadcast %cst_89 : f32 to vector<2x2xf32>
    %128 = arith.mulf %126, %127 : vector<2x2xf32>
    %cst_90 = arith.constant dense<0xFF800000> : vector<2xf32>
    %129 = vector.multi_reduction <maximumf>, %128, %cst_90 [1] : vector<2x2xf32> to vector<2xf32>
    %130 = vector.shape_cast %129 : vector<2xf32> to vector<2x1xf32>
    %131 = vector.broadcast %130 : vector<2x1xf32> to vector<2x2xf32>
    %132 = arith.subf %128, %131 : vector<2x2xf32>
    %133 = math.exp %132 : vector<2x2xf32>
    %cst_91 = arith.constant dense<0.000000e+00> : vector<2xf32>
    %134 = vector.multi_reduction <add>, %133, %cst_91 [1] : vector<2x2xf32> to vector<2xf32>
    %135 = vector.shape_cast %134 : vector<2xf32> to vector<2x1xf32>
    %136 = vector.broadcast %135 : vector<2x1xf32> to vector<2x2xf32>
    %137 = arith.divf %133, %136 : vector<2x2xf32>
    %138 = arith.addf %102, %137 : vector<2x2xf32>
    %c3_92 = arith.constant 3 : index
    %c0_93 = arith.constant 0 : index
    %c0_94 = arith.constant 0 : index
    %139 = vector.load %arg4[%c3_92, %c0_93, %c0_94] : memref<4x32x32xf32, #tpu.memory_space<vmem>>, vector<1x32x32xf32>
    %140 = vector.shape_cast %139 : vector<1x32x32xf32> to vector<32x32xf32>
    %cst_95 = arith.constant dense<0.000000e+00> : vector<2x32xf32>
    %141 = tpu.matmul %1, %140, %cst_95 {dimension_numbers = #tpu.dot_dimension_numbers<[1], [0], [0], [1], [0, 0, 1, 1], [], []>} : vector<2x32xf32>, vector<32x32xf32>, vector<2x32xf32> -> vector<2x32xf32>
    %c3_96 = arith.constant 3 : index
    %c0_97 = arith.constant 0 : index
    %c0_98 = arith.constant 0 : index
    %142 = vector.load %arg5[%c3_96, %c0_97, %c0_98] : memref<4x1x32xf32, #tpu.memory_space<vmem>>, vector<1x1x32xf32>
    %143 = vector.shape_cast %142 : vector<1x1x32xf32> to vector<1x32xf32>
    %144 = vector.broadcast %143 : vector<1x32xf32> to vector<2x32xf32>
    %145 = arith.addf %141, %144 : vector<2x32xf32>
    %cst_99 = arith.constant dense<0.000000e+00> : vector<2x32xf32>
    %146 = tpu.matmul %137, %145, %cst_99 {dimension_numbers = #tpu.dot_dimension_numbers<[1], [0], [0], [1], [0, 0, 1, 1], [], []>} : vector<2x2xf32>, vector<2x32xf32>, vector<2x32xf32> -> vector<2x32xf32>
    %147 = arith.addf %111, %146 : vector<2x32xf32>
    %c0_100 = arith.constant 0 : index
    %c0_101 = arith.constant 0 : index
    %148 = vector.load %arg6[%c0_100, %c0_101] : memref<1x32xf32, #tpu.memory_space<vmem>>, vector<1x32xf32>
    %149 = vector.broadcast %148 : vector<1x32xf32> to vector<2x32xf32>
    %150 = arith.addf %147, %149 : vector<2x32xf32>
    %c0_102 = arith.constant 0 : index
    %c0_103 = arith.constant 0 : index
    %c0_104 = arith.constant 0 : index
    %151 = vector.load %arg15[%c0_102, %c0_103, %c0_104] : memref<1x2x32xf32, #tpu.memory_space<vmem>>, vector<1x2x32xf32>
    %152 = vector.shape_cast %151 : vector<1x2x32xf32> to vector<2x32xf32>
    %153 = vector.shape_cast %150 : vector<2x32xf32> to vector<1x2x32xf32>
    tpu.vector_store %arg15[%c0_102, %c0_103, %c0_104], %153 {strides = array<i32>} : memref<1x2x32xf32, #tpu.memory_space<vmem>>, vector<1x2x32xf32>,
    %cst_105 = arith.constant 2.500000e-01 : f32
    %154 = vector.broadcast %cst_105 : f32 to vector<2x2xf32>
    %155 = arith.mulf %138, %154 : vector<2x2xf32>
    %c0_106 = arith.constant 0 : index
    %c0_107 = arith.constant 0 : index
    %c0_108 = arith.constant 0 : index
    %156 = vector.load %arg16[%c0_106, %c0_107, %c0_108] : memref<1x2x2xf32, #tpu.memory_space<vmem>>, vector<1x2x2xf32>
    %157 = vector.shape_cast %156 : vector<1x2x2xf32> to vector<2x2xf32>
    %158 = vector.shape_cast %155 : vector<2x2xf32> to vector<1x2x2xf32>
    tpu.vector_store %arg16[%c0_106, %c0_107, %c0_108], %158 {strides = array<i32>} : memref<1x2x2xf32, #tpu.memory_space<vmem>>, vector<1x2x2xf32>,
    %c0_109 = arith.constant 0 : index
    %c0_110 = arith.constant 0 : index
    %159 = vector.load %arg7[%c0_109, %c0_110] : memref<32x128xf32, #tpu.memory_space<vmem>>, vector<32x128xf32>
    %cst_111 = arith.constant dense<0.000000e+00> : vector<2x128xf32>
    %160 = tpu.matmul %150, %159, %cst_111 {dimension_numbers = #tpu.dot_dimension_numbers<[1], [0], [0], [1], [0, 0, 1, 1], [], []>} : vector<2x32xf32>, vector<32x128xf32>, vector<2x128xf32> -> vector<2x128xf32>
    %c0_112 = arith.constant 0 : index
    %c0_113 = arith.constant 0 : index
    %161 = vector.load %arg8[%c0_112, %c0_113] : memref<1x128xf32, #tpu.memory_space<vmem>>, vector<1x128xf32>
    %162 = vector.broadcast %161 : vector<1x128xf32> to vector<2x128xf32>
    %163 = arith.addf %160, %162 : vector<2x128xf32>
    %cst_114 = arith.constant 0.000000e+00 : f32
    %164 = vector.broadcast %cst_114 : f32 to vector<2x128xf32>
    %165 = arith.maximumf %163, %164 : vector<2x128xf32>
    %c0_115 = arith.constant 0 : index
    %c0_116 = arith.constant 0 : index
    %166 = vector.load %arg9[%c0_115, %c0_116] : memref<128x96xf32, #tpu.memory_space<vmem>>, vector<128x96xf32>
    %cst_117 = arith.constant dense<0.000000e+00> : vector<2x96xf32>
    %167 = tpu.matmul %165, %166, %cst_117 {dimension_numbers = #tpu.dot_dimension_numbers<[1], [0], [0], [1], [0, 0, 1, 1], [], []>} : vector<2x128xf32>, vector<128x96xf32>, vector<2x96xf32> -> vector<2x96xf32>
    %c0_118 = arith.constant 0 : index
    %c0_119 = arith.constant 0 : index
    %168 = vector.load %arg10[%c0_118, %c0_119] : memref<1x96xf32, #tpu.memory_space<vmem>>, vector<1x96xf32>
    %169 = vector.broadcast %168 : vector<1x96xf32> to vector<2x96xf32>
    %170 = arith.addf %167, %169 : vector<2x96xf32>
    %cst_120 = arith.constant 0.000000e+00 : f32
    %171 = vector.broadcast %cst_120 : f32 to vector<2x96xf32>
    %172 = arith.maximumf %170, %171 : vector<2x96xf32>
    %c0_121 = arith.constant 0 : index
    %c0_122 = arith.constant 0 : index
    %173 = vector.load %arg11[%c0_121, %c0_122] : memref<96x2xf32, #tpu.memory_space<vmem>>, vector<96x2xf32>
    %cst_123 = arith.constant dense<0.000000e+00> : vector<2x2xf32>
    %174 = tpu.matmul %172, %173, %cst_123 {dimension_numbers = #tpu.dot_dimension_numbers<[1], [0], [0], [1], [0, 0, 1, 1], [], []>} : vector<2x96xf32>, vector<96x2xf32>, vector<2x2xf32> -> vector<2x2xf32>
    %c0_124 = arith.constant 0 : index
    %c0_125 = arith.constant 0 : index
    %175 = vector.load %arg12[%c0_124, %c0_125] : memref<1x2xf32, #tpu.memory_space<vmem>>, vector<1x2xf32>
    %176 = vector.broadcast %175 : vector<1x2xf32> to vector<2x2xf32>
    %177 = arith.addf %174, %176 : vector<2x2xf32>
    %c0_126 = arith.constant 0 : index
    %c0_127 = arith.constant 0 : index
    %178 = vector.load %arg13[%c0_126, %c0_127] : memref<128x3xf32, #tpu.memory_space<vmem>>, vector<128x3xf32>
    %cst_128 = arith.constant dense<0.000000e+00> : vector<2x3xf32>
    %179 = tpu.matmul %165, %178, %cst_128 {dimension_numbers = #tpu.dot_dimension_numbers<[1], [0], [0], [1], [0, 0, 1, 1], [], []>} : vector<2x128xf32>, vector<128x3xf32>, vector<2x3xf32> -> vector<2x3xf32>
    %c0_129 = arith.constant 0 : index
    %c0_130 = arith.constant 0 : index
    %180 = vector.load %arg14[%c0_129, %c0_130] : memref<1x3xf32, #tpu.memory_space<vmem>>, vector<1x3xf32>
    %181 = vector.broadcast %180 : vector<1x3xf32> to vector<2x3xf32>
    %182 = arith.addf %179, %181 : vector<2x3xf32>
    %183 = vector.extract_strided_slice %177 {offsets = [0, 0], sizes = [2, 1], strides = [1, 1]} : vector<2x2xf32> to vector<2x1xf32>
    %184 = arith.negf %183 : vector<2x1xf32>
    %185 = math.exp %184 : vector<2x1xf32>
    %cst_131 = arith.constant 1.000000e+00 : f32
    %186 = vector.broadcast %cst_131 : f32 to vector<2x1xf32>
    %187 = arith.addf %186, %185 : vector<2x1xf32>
    %188 = arith.divf %186, %187 : vector<2x1xf32>
    %c0_132 = arith.constant 0 : index
    %c0_133 = arith.constant 0 : index
    %c0_134 = arith.constant 0 : index
    %189 = vector.load %arg17[%c0_132, %c0_133, %c0_134] : memref<1x2x5xf32, #tpu.memory_space<vmem>>, vector<1x2x1xf32>
    %190 = vector.shape_cast %189 : vector<1x2x1xf32> to vector<2x1xf32>
    %191 = vector.shape_cast %188 : vector<2x1xf32> to vector<1x2x1xf32>
    tpu.vector_store %arg17[%c0_132, %c0_133, %c0_134], %191 {strides = array<i32>} : memref<1x2x5xf32, #tpu.memory_space<vmem>>, vector<1x2x1xf32>,
    %192 = vector.extract_strided_slice %177 {offsets = [0, 1], sizes = [2, 1], strides = [1, 1]} : vector<2x2xf32> to vector<2x1xf32>
    %c0_135 = arith.constant 0 : index
    %c0_136 = arith.constant 0 : index
    %c1_137 = arith.constant 1 : index
    %193 = vector.load %arg17[%c0_135, %c0_136, %c1_137] : memref<1x2x5xf32, #tpu.memory_space<vmem>>, vector<1x2x1xf32>
    %194 = vector.shape_cast %193 : vector<1x2x1xf32> to vector<2x1xf32>
    %195 = vector.shape_cast %192 : vector<2x1xf32> to vector<1x2x1xf32>
    tpu.vector_store %arg17[%c0_135, %c0_136, %c1_137], %195 {strides = array<i32>} : memref<1x2x5xf32, #tpu.memory_space<vmem>>, vector<1x2x1xf32>,
    %196 = vector.extract_strided_slice %182 {offsets = [0, 0], sizes = [2, 2], strides = [1, 1]} : vector<2x3xf32> to vector<2x2xf32>
    %cst_138 = arith.constant dense<0xFF800000> : vector<2xf32>
    %197 = vector.multi_reduction <maximumf>, %196, %cst_138 [1] : vector<2x2xf32> to vector<2xf32>
    %198 = vector.shape_cast %197 : vector<2xf32> to vector<2x1xf32>
    %199 = vector.broadcast %198 : vector<2x1xf32> to vector<2x2xf32>
    %200 = arith.subf %196, %199 : vector<2x2xf32>
    %201 = math.exp %200 : vector<2x2xf32>
    %cst_139 = arith.constant dense<0.000000e+00> : vector<2xf32>
    %202 = vector.multi_reduction <add>, %201, %cst_139 [1] : vector<2x2xf32> to vector<2xf32>
    %203 = vector.shape_cast %202 : vector<2xf32> to vector<2x1xf32>
    %204 = vector.broadcast %203 : vector<2x1xf32> to vector<2x2xf32>
    %205 = arith.divf %201, %204 : vector<2x2xf32>
    %c0_140 = arith.constant 0 : index
    %c0_141 = arith.constant 0 : index
    %c2_142 = arith.constant 2 : index
    %206 = vector.load %arg17[%c0_140, %c0_141, %c2_142] : memref<1x2x5xf32, #tpu.memory_space<vmem>>, vector<1x2x2xf32>
    %207 = vector.shape_cast %206 : vector<1x2x2xf32> to vector<2x2xf32>
    %208 = vector.shape_cast %205 : vector<2x2xf32> to vector<1x2x2xf32>
    tpu.vector_store %arg17[%c0_140, %c0_141, %c2_142], %208 {strides = array<i32>} : memref<1x2x5xf32, #tpu.memory_space<vmem>>, vector<1x2x2xf32>,
    %209 = vector.extract_strided_slice %182 {offsets = [0, 2], sizes = [2, 1], strides = [1, 1]} : vector<2x3xf32> to vector<2x1xf32>
    %c0_143 = arith.constant 0 : index
    %c0_144 = arith.constant 0 : index
    %c4_145 = arith.constant 4 : index
    %210 = vector.load %arg17[%c0_143, %c0_144, %c4_145] : memref<1x2x5xf32, #tpu.memory_space<vmem>>, vector<1x2x1xf32>
    %211 = vector.shape_cast %210 : vector<1x2x1xf32> to vector<2x1xf32>
    %212 = vector.shape_cast %209 : vector<2x1xf32> to vector<1x2x1xf32>
    tpu.vector_store %arg17[%c0_143, %c0_144, %c4_145], %212 {strides = array<i32>} : memref<1x2x5xf32, #tpu.memory_space<vmem>>, vector<1x2x1xf32>,
    return
  }
  func.func @transform_0(%arg0: i32) -> (i32, i32, i32) {
    %c0_i32 = arith.constant 0 : i32
    %c0_i32_0 = arith.constant 0 : i32
    %c0_i32_1 = arith.constant 0 : i32
    return %arg0, %c0_i32, %c0_i32_0 : i32, i32, i32
  }
  func.func @transform_1(%arg0: i32) -> (i32, i32, i32) {
    %c0_i32 = arith.constant 0 : i32
    %c0_i32_0 = arith.constant 0 : i32
    %c0_i32_1 = arith.constant 0 : i32
    %c0_i32_2 = arith.constant 0 : i32
    return %c0_i32, %c0_i32_0, %c0_i32_1 : i32, i32, i32
  }
  func.func @transform_2(%arg0: i32) -> (i32, i32, i32) {
    %c0_i32 = arith.constant 0 : i32
    %c0_i32_0 = arith.constant 0 : i32
    %c0_i32_1 = arith.constant 0 : i32
    %c0_i32_2 = arith.constant 0 : i32
    return %c0_i32, %c0_i32_0, %c0_i32_1 : i32, i32, i32
  }
  func.func @transform_3(%arg0: i32) -> (i32, i32, i32) {
    %c0_i32 = arith.constant 0 : i32
    %c0_i32_0 = arith.constant 0 : i32
    %c0_i32_1 = arith.constant 0 : i32
    %c0_i32_2 = arith.constant 0 : i32
    return %c0_i32, %c0_i32_0, %c0_i32_1 : i32, i32, i32
  }
  func.func @transform_4(%arg0: i32) -> (i32, i32, i32) {
    %c0_i32 = arith.constant 0 : i32
    %c0_i32_0 = arith.constant 0 : i32
    %c0_i32_1 = arith.constant 0 : i32
    %c0_i32_2 = arith.constant 0 : i32
    return %c0_i32, %c0_i32_0, %c0_i32_1 : i32, i32, i32
  }
  func.func @transform_5(%arg0: i32) -> (i32, i32) {
    %c0_i32 = arith.constant 0 : i32
    %c0_i32_0 = arith.constant 0 : i32
    %c0_i32_1 = arith.constant 0 : i32
    return %c0_i32, %c0_i32_0 : i32, i32
  }
  func.func @transform_6(%arg0: i32) -> (i32, i32) {
    %c0_i32 = arith.constant 0 : i32
    %c0_i32_0 = arith.constant 0 : i32
    %c0_i32_1 = arith.constant 0 : i32
    return %c0_i32, %c0_i32_0 : i32, i32
  }
  func.func @transform_7(%arg0: i32) -> (i32, i32) {
    %c0_i32 = arith.constant 0 : i32
    %c0_i32_0 = arith.constant 0 : i32
    %c0_i32_1 = arith.constant 0 : i32
    return %c0_i32, %c0_i32_0 : i32, i32
  }
  func.func @transform_8(%arg0: i32) -> (i32, i32) {
    %c0_i32 = arith.constant 0 : i32
    %c0_i32_0 = arith.constant 0 : i32
    %c0_i32_1 = arith.constant 0 : i32
    return %c0_i32, %c0_i32_0 : i32, i32
  }
  func.func @transform_9(%arg0: i32) -> (i32, i32) {
    %c0_i32 = arith.constant 0 : i32
    %c0_i32_0 = arith.constant 0 : i32
    %c0_i32_1 = arith.constant 0 : i32
    return %c0_i32, %c0_i32_0 : i32, i32
  }
  func.func @transform_10(%arg0: i32) -> (i32, i32) {
    %c0_i32 = arith.constant 0 : i32
    %c0_i32_0 = arith.constant 0 : i32
    %c0_i32_1 = arith.constant 0 : i32
    return %c0_i32, %c0_i32_0 : i32, i32
  }
  func.func @transform_11(%arg0: i32) -> (i32, i32) {
    %c0_i32 = arith.constant 0 : i32
    %c0_i32_0 = arith.constant 0 : i32
    %c0_i32_1 = arith.constant 0 : i32
    return %c0_i32, %c0_i32_0 : i32, i32
  }
  func.func @transform_12(%arg0: i32) -> (i32, i32) {
    %c0_i32 = arith.constant 0 : i32
    %c0_i32_0 = arith.constant 0 : i32
    %c0_i32_1 = arith.constant 0 : i32
    return %c0_i32, %c0_i32_0 : i32, i32
  }
  func.func @transform_13(%arg0: i32) -> (i32, i32) {
    %c0_i32 = arith.constant 0 : i32
    %c0_i32_0 = arith.constant 0 : i32
    %c0_i32_1 = arith.constant 0 : i32
    return %c0_i32, %c0_i32_0 : i32, i32
  }
  func.func @transform_14(%arg0: i32) -> (i32, i32, i32) {
    %c0_i32 = arith.constant 0 : i32
    %c0_i32_0 = arith.constant 0 : i32
    %c0_i32_1 = arith.constant 0 : i32
    return %arg0, %c0_i32, %c0_i32_0 : i32, i32, i32
  }
  func.func @transform_15(%arg0: i32) -> (i32, i32, i32) {
    %c0_i32 = arith.constant 0 : i32
    %c0_i32_0 = arith.constant 0 : i32
    %c0_i32_1 = arith.constant 0 : i32
    return %arg0, %c0_i32, %c0_i32_0 : i32, i32, i32
  }
  func.func @transform_16(%arg0: i32) -> (i32, i32, i32) {
    %c0_i32 = arith.constant 0 : i32
    %c0_i32_0 = arith.constant 0 : i32
    %c0_i32_1 = arith.constant 0 : i32
    return %arg0, %c0_i32, %c0_i32_0 : i32, i32, i32
  }
}

</mosaic_0001>

<bundles_post_ra>
// kernel: tpu_custom_call.1
= control target key start
LH: loop header
LB: loop body
LE: loop exit
PB: predicated region body
PF: predicated region fallthrough
CT: control target
= control target key end

     0   :  { %s4161_s0 = inlined_call_operand.vmem [shape: f32[8,2,32], index: 0, kind: input, shape index: {}]   ;;  %s4162_s1 = inlined_call_operand.vmem [shape: f32[8,32,8], index: 1, kind: input, shape index: {}]   ;;  %s4163_s2 = inlined_call_operand.vmem [shape: f32[8,1,8], index: 2, kind: input, shape index: {}]   ;;  %s4164_s3 = inlined_call_operand.vmem [shape: f32[4,32,32], index: 3, kind: input, shape index: {}]   ;;  %s4165_s4 = inlined_call_operand.vmem [shape: f32[4,1,32], index: 4, kind: input, shape index: {}]   ;;  %s4166_s5 = inlined_call_operand.vmem [shape: f32[1,32], index: 5, kind: input, shape index: {}]   ;;  %s4167_s6 = inlined_call_operand.vmem [shape: f32[32,128], index: 6, kind: input, shape index: {}]   ;;  %s4168_s7 = inlined_call_operand.vmem [shape: f32[1,128], index: 7, kind: input, shape index: {}]   ;;  %s4169_s8 = inlined_call_operand.vmem [shape: f32[128,96], index: 8, kind: input, shape index: {}]   ;;  %s4170_s9 = inlined_call_operand.vmem [shape: f32[1,96], index: 9, kind: input, shape index: {}]   ;;  %s4171_s10 = inlined_call_operand.vmem [shape: f32[96,2], index: 10, kind: input, shape index: {}]   ;;  %s4172_s11 = inlined_call_operand.vmem [shape: f32[1,2], index: 11, kind: input, shape index: {}]   ;;  %s4173_s12 = inlined_call_operand.vmem [shape: f32[128,3], index: 12, kind: input, shape index: {}]   ;;  %s4174_s13 = inlined_call_operand.vmem [shape: f32[1,3], index: 13, kind: input, shape index: {}]   ;;  %s4175_s14 = inlined_call_operand.hbm [shape: f32[8,2,32], index: 14, kind: output, shape index: {0}]   ;;  %s4176_s15 = inlined_call_operand.vmem [shape: f32[8,2,2], index: 15, kind: output, shape index: {1}]   ;;  %s4177_s16 = inlined_call_operand.vmem [shape: f32[8,2,5], index: 16, kind: output, shape index: {2}]  }
   0x1   :  { %4185 = sst [smem:[#allocation9_spill]] %s4161_s0 }
   0x2   :  { %4186 = sst [smem:[#allocation10_spill]] %s4162_s1 }
   0x3   :  { %4187 = sst [smem:[#allocation11_spill]] %s4163_s2 }
   0x4   :  { %4188 = sst [smem:[#allocation12_spill]] %s4164_s3 }
   0x5   :  { %4189 = sst [smem:[#allocation13_spill]] %s4165_s4 }
   0x6   :  { %22 = vsyncpa [#allocation3], 0 }
   0x7   :  { %24 = vsyncpa [#allocation3 + $0x1], 0  ;;  %s3481_s21 = smov 0   ;;  %s3483_s22 = smov 0  }
   0x8   :  { %s3485_s23 = smov 0   ;;  %s3487_s24 = smov 0  }
   0x9 LB: > { %4190 = sst [smem:[#allocation5_spill]] %s3386_s23  ;;  %s3502_s25 = sadd.s32 4294967295, %s3390_s24   ;;  %s3390_s24 = sphi %s3487_s24, %s4205_s24   ;;  %s3386_s23 = sphi %s3485_s23, %s4207_s23   ;;  %s3382_s22 = sphi %s3483_s22, %s4209_s22   ;;  %s3378_s21 = sphi %s3481_s21, %s4208_s21  }
   0xa   : > { %s2746_s26 = sadd.s32 4294967294, %s3390_s24   ;;  %s3506_s27 = sadd.s32 1, %s3390_s24  }
   0xb   : > { %4191 = sst [smem:[#allocation6_spill]] %s3506_s27  ;;  %s336_s28 = sadd.s32 1, %s3386_s23 }
   0xc   : > { %s333_s29 = ssub.s32 %s3390_s24, %s3506_s27  ;;  %p346_p0 = scmp.ne.s32.totalorder %s3386_s23, %s3382_s22 }
   0xd   : > { %p334_p1 = scmp.eq.s32.totalorder %s333_s29, 0  ;;  %p347_p2 = scmp.eq.s32.totalorder %s3502_s25, 7 }
   0xe   : > { %p352_p3 = scmp.ne.s32.totalorder %s3382_s22, %s3378_s21  ;;  %p353_p4 = scmp.eq.s32.totalorder %s2746_s26, 7 }
   0xf   : > { %s3517_s30 = scalar_select %p334_p1, %s3386_s23, %s336_s28  }
  0x10   : > { %p3519_p5 = por %p347_p2, %p346_p0  ;;  %p3523_p6 = por %p353_p4, %p352_p3 }
  0x11   : > { %4192 = sst [smem:[#allocation7_spill]] %s3517_s30  ;;  %p2749_p7 = scmp.ge.s32.totalorder %s3390_s24, 1 }
  0x12   : > { %s4194_s17 = scalar_select %p3523_p6, 1, 0 }
  0x13   : > { %p469_p8 = scmp.lt.s32.totalorder %s3390_s24, 9 }
  0x14   : > { %4195 = sst [smem:[#allocation8_spill]] %s4194_s17 }
  0x15   : > { %p470_p9 = pnand %p2749_p7, %p469_p8 }
  0x16   : > { %s4196_s1 = sld [smem:[#allocation10_spill]] (!%p470_p9)  ;;  %p526_p10 = scmp.lt.s32.totalorder (!%p470_p9), %s3502_s25, 7 }
  0x17   : > { %473 = sbr.rel (%p470_p9) target bundleno = 3448 (0xd78), region = 76  ;;  %s4197_s27 = sld [smem:[#allocation9_spill]] (!%p470_p9) }
  0x18   : > { %s4198_s3 = sld [smem:[#allocation12_spill]] (!%p470_p9)  ;;  %s2853_s18 = sshll.u32 (!%p470_p9), %s3502_s25, 5 }
  0x19   : > { %s4199_s2 = sld [smem:[#allocation11_spill]] (!%p470_p9) }
  0x1a   : > { %s4200_s4 = sld [smem:[#allocation13_spill]] (!%p470_p9) }
  0x1c   : > { %v542_v0 = vld [vmem:[%s4196_s1 + $0x18] sm:$0xff]  ;;  %v3392_v1 = vmov 0.0   ;;  %v541_v2 = vld [vmem:[%s4196_s1 + $0x10] sm:$0xff]  ;;  %vm3393_vm0 = vmmov 0   ;;  %s527_s28 = scalar_select %p526_p10, %s3502_s25, 7  ;;  %v540_v3 = vld [vmem:[%s4196_s1 + $0x8] sm:$0xff] }
  0x1d   : > { %2984 = vmatprep.subr.mxu1 %v3392_v1  ;;  %2992 = vmatprep.mubr.msk.f32.mxu1 %vm3393_vm0, %v3392_v1  ;;  %v539_v4 = vld [vmem:[%s4196_s1] sm:$0xff]  ;;  %vm550_vm1 = vcmask 261120   ;;  %v2759_v6 = vld [vmem:[%s4196_s1 + $0x98] sm:$0xff]  ;;  %v2758_v7 = vld [vmem:[%s4196_s1 + $0x90] sm:$0xff]  ;;  %vm707_vm2 = vcmask 64512   ;;  %vm785_vm3 = vcmask 9216  }
  0x1e   : > { %2985 = vmatpush3.msra.mxu1 %v542_v0  ;;  %3006 = vmatprep.subr.mxu0 %v3392_v1  ;;  %s3547_s19 = sshll.u32 %s527_s28, 1  ;;  %v2757_v8 = vld [vmem:[%s4196_s1 + $0x88] sm:$0xff]  ;;  %v2756_v9 = vld [vmem:[%s4196_s1 + $0x80] sm:$0xff]  ;;  %v801_v10 = vld [vmem:[%s4198_s3 + $0x18] sm:$0xff]  ;;  %vm1221_vm4 = vcmask 1041408   ;;  %vm1217_vm5 = vcmask 15360  }
  0x1f   : > { %2986 = vmatprep.subr.mxu1 %v3392_v1  ;;  %3008 = vmatprep.mubr.msk.f32.mxu0 %vm3393_vm0, %v3392_v1  ;;  %s529_s17 = scalar_lea.vmem %s4197_s27, %s3547_s19  ;;  %v800_v11 = vld [vmem:[%s4198_s3 + $0x10] sm:$0xff]  ;;  %v799_v12 = vld [vmem:[%s4198_s3 + $0x8] sm:$0xff]  ;;  %v798_v13 = vld [vmem:[%s4198_s3] sm:$0xff]  ;;  %s533_s26 = scalar_lea.vmem %s4176_s15, %s3547_s19  ;;  %vm2209_vm6 = vcmask 254976   ;;  %vm2411_vm7 = vcmask 785408   ;;  %vm2584_vm8 = vcmask 1024  }
  0x20   : > { %2987 = vmatpush3.msra.mxu1 %v541_v2  ;;  %v3557_v5 = vld [vmem:[%s529_s17] sm:$0x3]  ;;  %v2770_v14 = vld [vmem:[%s4196_s1 + $0x38] sm:$0xff]  ;;  %v2769_v15 = vld [vmem:[%s4196_s1 + $0x30] sm:$0xff]  ;;  %s4182_s27 = sand.u32 1, %s3382_s22   ;;  %s4114_s28 = scalar_lea.vmem %s4177_s16, %s3547_s19  ;;  %vm2586_vm9 = vcmask 9224  }
  0x21   : > { %2988 = vmatprep.subr.mxu1 %v3392_v1  ;;  %v2768_v16 = vld [vmem:[%s4196_s1 + $0x28] sm:$0xff]  ;;  %v2767_v17 = vld [vmem:[%s4196_s1 + $0x20] sm:$0xff]  ;;  %v2777_v18 = vld [vmem:[%s4196_s1 + $0xb8] sm:$0xff]  ;;  %s3959_s30 = sshll.u32 %s4182_s27, 1  ;;  %s4184_s19 = smov 2  }
  0x22   : > { %2989 = vmatpush3.msra.mxu1 %v540_v3  ;;  %v2776_v19 = vld [vmem:[%s4196_s1 + $0xb0] sm:$0xff]  ;;  %v2775_v20 = vld [vmem:[%s4196_s1 + $0xa8] sm:$0xff]  ;;  %v2774_v21 = vld [vmem:[%s4196_s1 + $0xa0] sm:$0xff]  ;;  %s4183_s29 = scalar_lea.vmem [#allocation2], %s3959_s30  ;;  %s4201_s20 = scalar_lea.vmem [#allocation2], %s3959_s30 }
  0x23   : > { %2990 = vmatprep.subr.mxu1 %v3392_v1  ;;  %v2761_v24 = vld [vmem:[%s4199_s2 + $0x4] ss:$0 sm:$0xff]  ;;  %v2754_v26 = vld [vmem:[%s4199_s2] ss:$0 sm:$0xff]  ;;  %v2779_v34 = vld [vmem:[%s4199_s2 + $0x5] ss:$0 sm:$0xff]  ;;  %s2631_s27 = scalar_lea.hbm %s4175_s14, %s2853_s18 }
  0x24   : > { %2991 = vmatpush3.msra.mxu1 %v539_v4  ;;  %v2772_v36 = vld [vmem:[%s4199_s2 + $0x1] ss:$0 sm:$0xff]  ;;  %v2786_v40 = vld [vmem:[%s4198_s3 + $0x38] sm:$0xff]  ;;  %v2785_v41 = vld [vmem:[%s4198_s3 + $0x30] sm:$0xff]  ;;  %s2633_s23 = sshll.u32 %s4201_s20, 4  ;;  %s2634_s23 = int_to_ptr.vmem [resolvable:$true] %s2633_s23 }
  0x25   : > { %2993 = vmatmul.mubr.msk.f32.vlgmr.msra.gmra.mxu1 %vm550_vm1, %v3557_v5  ;;  %2995 = vmatprep.subr.mxu1 %v3392_v1  ;;  %v2784_v42 = vld [vmem:[%s4198_s3 + $0x28] sm:$0xff]  ;;  %v2783_v43 = vld [vmem:[%s4198_s3 + $0x20] sm:$0xff]  ;;  %v2797_v3 = vld [vmem:[%s4196_s1 + $0x58] sm:$0xff] }
  0x26   : > { %2996 = vmatpush3.msra.mxu1 %v2759_v6  ;;  %3003 = vmatprep.mubr.msk.f32.mxu1 %vm3393_vm0, %v3392_v1  ;;  %v2788_v62 = vld [vmem:[%s4200_s4 + $0x1] ss:$0 sm:$0xff]  ;;  %v2796_v4 = vld [vmem:[%s4196_s1 + $0x50] sm:$0xff]  ;;  %v2795_v6 = vld [vmem:[%s4196_s1 + $0x48] sm:$0xff] }
  0x27   : > { %2997 = vmatprep.subr.mxu1 %v3392_v1 }
  0x28   : > { %2998 = vmatpush3.msra.mxu1 %v2758_v7  ;;  %v2794_v7 = vld [vmem:[%s4196_s1 + $0x40] sm:$0xff] }
  0x29   : > { %2999 = vmatprep.subr.mxu1 %v3392_v1 }
  0x2a   : > { %3000 = vmatpush3.msra.mxu1 %v2757_v8 }
  0x2b   : > { %3001 = vmatprep.subr.mxu1 %v3392_v1 }
  0x2c   : > { %3002 = vmatpush3.msra.mxu1 %v2756_v9 }
  0x2d   : > { %3004 = vmatmul.mubr.msk.f32.vlgmr.msra.gmra.mxu1 %vm550_vm1, %v3557_v5  ;;  %3011 = vmatprep.subr.mxu1 %v3392_v1 }
  0x2e   : > { %3012 = vmatpush3.msra.mxu1 %v801_v10  ;;  %3019 = vmatprep.mubr.msk.f32.mxu1 %vm3393_vm0, %v3392_v1  ;;  %v2765_v10 = vld [vmem:[%s4200_s4] ss:$0 sm:$0xff] }
  0x2f   : > { %3013 = vmatprep.subr.mxu1 %v3392_v1 }
  0x30   : > { %3014 = vmatpush3.msra.mxu1 %v800_v11 }
  0x31   : > { %3015 = vmatprep.subr.mxu1 %v3392_v1 }
  0x32   : > { %3016 = vmatpush3.msra.mxu1 %v799_v12 }
  0x33   : > { %3017 = vmatprep.subr.mxu1 %v3392_v1 }
  0x34   : > { %3018 = vmatpush3.msra.mxu1 %v798_v13 }
  0x35   : > { %3020 = vmatmul.mubr.msk.f32.vlgmr.msra.gmra.mxu1 %vm550_vm1, %v3557_v5  ;;  %3022 = vmatprep.subr.mxu1 %v3392_v1 }
  0x36   : > { %3023 = vmatpush3.msra.mxu1 %v2770_v14  ;;  %3030 = vmatprep.mubr.msk.f32.mxu1 %vm3393_vm0, %v3392_v1 }
  0x37   : > { %3024 = vmatprep.subr.mxu1 %v3392_v1 }
  0x38   : > { %3025 = vmatpush3.msra.mxu1 %v2769_v15 }
  0x39   : > { %3026 = vmatprep.subr.mxu1 %v3392_v1 }
  0x3a   : > { %3027 = vmatpush3.msra.mxu1 %v2768_v16  ;;  %v2804_v16 = vld [vmem:[%s4196_s1 + $0xd8] sm:$0xff] }
  0x3b   : > { %3028 = vmatprep.subr.mxu1 %v3392_v1 }
  0x3c   : > { %3029 = vmatpush3.msra.mxu1 %v2767_v17 }
  0x3d   : > { %3031 = vmatmul.mubr.msk.f32.vlgmr.msra.gmra.mxu1 %vm550_vm1, %v3557_v5  ;;  %3033 = vmatprep.subr.mxu1 %v3392_v1 }
  0x3e   : > { %3034 = vmatpush3.msra.mxu1 %v2777_v18  ;;  %3041 = vmatprep.mubr.msk.f32.mxu1 %vm3393_vm0, %v3392_v1  ;;  %v2803_v18 = vld [vmem:[%s4196_s1 + $0xd0] sm:$0xff] }
  0x3f   : > { %3035 = vmatprep.subr.mxu1 %v3392_v1 }
  0x40   : > { %3036 = vmatpush3.msra.mxu1 %v2776_v19  ;;  %v2802_v19 = vld [vmem:[%s4196_s1 + $0xc8] sm:$0xff] }
  0x41   : > { %3037 = vmatprep.subr.mxu1 %v3392_v1 }
  0x42   : > { %3038 = vmatpush3.msra.mxu1 %v2775_v20  ;;  %v2801_v20 = vld [vmem:[%s4196_s1 + $0xc0] sm:$0xff] }
  0x43   : > { %3039 = vmatprep.subr.mxu1 %v3392_v1 }
  0x44   : > { %3040 = vmatpush3.msra.mxu1 %v2774_v21 }
  0x45   : > { %3042 = vmatmul.mubr.msk.f32.vlgmr.msra.gmra.mxu1 %vm550_vm1, %v3557_v5  ;;  %3060 = vmatprep.subr.mxu1 %v3392_v1 }
  0x46   : > { %3062 = vmatprep.mubr.msk.f32.mxu1 %vm3393_vm0, %v3392_v1 }
  0xe5   : > { %v620_v22 = vpop.f32.mrf.mxu1 }
  0xe6   : > { %v621_v29 = vadd.f32 %v2754_v26, %v620_v22 }
  0xe7   : > { %v2994_v23 = vpop.f32.mrf.mxu1 }
  0xed   : > { %v703_v25 = vpop.f32.mrf.mxu1 }
  0xee   : > { %v704_v27 = vadd.f32 %v2761_v24, %v703_v25 }
  0xef   : > { %v3005_v28 = vpop.f32.mrf.mxu1 }
  0xf0   : > { %3007 = vmatpush3.xpose.msk.msra.mxu0 %vm707_vm2, %v704_v27  ;;  %v2806_v28 = vld [vmem:[%s4199_s2 + $0x6] ss:$0 sm:$0xff] }
  0xf1   : > { %3044 = vmatprep.subr.mxu0 %v3392_v1 }
  0xf3   : > { %3009 = vmatmul.mubr.msk.f32.vlgmr.msra.gmra.mxu0 %vm707_vm2, %v621_v29  ;;  %v2799_v29 = vld [vmem:[%s4199_s2 + $0x2] ss:$0 sm:$0xff] }
  0xf4   : > { %3046 = vmatprep.mubr.msk.f32.mxu0 %vm3393_vm0, %v3392_v1 }
  0xf5   : > { %v3656_v30 = vpop.f32.mrf.mxu1 }
  0xf6   : > { %v876_v13 = vadd.f32 %v2765_v10, %v3656_v30 }
  0xf7   : > { %v3021_v31 = vpop.f32.mrf.mxu1 }
  0xfd   : > { %v958_v32 = vpop.f32.mrf.mxu1 }
  0xfe   : > { %v959_v39 = vadd.f32 %v2772_v36, %v958_v32  ;;  %v2811_v36 = vld [vmem:[%s4198_s3 + $0x48] sm:$0xff] }
  0xff   : > { %v3032_v33 = vpop.f32.mrf.mxu1 }
 0x105   : > { %v1041_v35 = vpop.f32.mrf.mxu1 }
 0x106   : > { %v1042_v37 = vadd.f32 %v2779_v34, %v1041_v35  ;;  %v2813_v34 = vld [vmem:[%s4198_s3 + $0x58] sm:$0xff]  ;;  %v2812_v35 = vld [vmem:[%s4198_s3 + $0x50] sm:$0xff] }
 0x107   : > { %v3043_v38 = vpop.f32.mrf.mxu1 }
 0x108   : > { %3045 = vmatpush3.xpose.msk.msra.mxu0 %vm707_vm2, %v1042_v37  ;;  %v2810_v37 = vld [vmem:[%s4198_s3 + $0x40] sm:$0xff] }
 0x109   : > { %3049 = vmatprep.subr.mxu0 %v3392_v1 }
 0x10b   : > { %3047 = vmatmul.mubr.msk.f32.vlgmr.msra.gmra.mxu0 %vm707_vm2, %v959_v39 }
 0x10c   : > { %3057 = vmatprep.mubr.msk.f32.mxu0 %vm3393_vm0, %v3392_v1  ;;  %3050 = vmatpush3.msra.mxu0 %v2786_v40 }
 0x10d   : > { %3051 = vmatprep.subr.mxu0 %v3392_v1 }
 0x10e   : > { %3052 = vmatpush3.msra.mxu0 %v2785_v41 }
 0x10f   : > { %3053 = vmatprep.subr.mxu0 %v3392_v1 }
 0x110   : > { %3054 = vmatpush3.msra.mxu0 %v2784_v42 }
 0x111   : > { %3055 = vmatprep.subr.mxu0 %v3392_v1 }
 0x112   : > { %3056 = vmatpush3.msra.mxu0 %v2783_v43 }
 0x113   : > { %3058 = vmatmul.mubr.msk.f32.vlgmr.msra.gmra.mxu0 %vm550_vm1, %v3557_v5  ;;  %3070 = vmatprep.subr.mxu0 %v3392_v1 }
 0x114   : > { %3078 = vmatprep.mubr.msk.f32.mxu0 %vm3393_vm0, %v3392_v1  ;;  %3071 = vmatpush3.msra.mxu0 %v2797_v3 }
 0x115   : > { %3072 = vmatprep.subr.mxu0 %v3392_v1 }
 0x116   : > { %3073 = vmatpush3.msra.mxu0 %v2796_v4 }
 0x117   : > { %3074 = vmatprep.subr.mxu0 %v3392_v1 }
 0x118   : > { %3075 = vmatpush3.msra.mxu0 %v2795_v6 }
 0x119   : > { %3076 = vmatprep.subr.mxu0 %v3392_v1 }
 0x11a   : > { %3077 = vmatpush3.msra.mxu0 %v2794_v7 }
 0x11b   : > { %3079 = vmatmul.mubr.msk.f32.vlgmr.msra.gmra.mxu0 %vm550_vm1, %v3557_v5  ;;  %3092 = vmatprep.subr.mxu0 %v3392_v1 }
 0x11c   : > { %3094 = vmatprep.mubr.msk.f32.mxu0 %vm3393_vm0, %v3392_v1 }
 0x1b3   : > { %v780_v44 = vpop.f32.mrf.mxu0 }
 0x1b4   : > { %v784_v49 = vmul.f32 0.35355338, %v780_v44 }
 0x1b5   : > { %v3010_v45 = vpop.f32.mrf.mxu0 }
 0x1b6   : > { %v786_v51 = vsel %vm785_vm3, %v784_v49, -inf }
 0x1cb   : > { %v1117_v46 = vpop.f32.mrf.mxu0 }
 0x1cc   : > { %v1121_v47 = vmul.f32 0.35355338, %v1117_v46 }
 0x1cd   : > { %v3048_v48 = vpop.f32.mrf.mxu0 }
 0x1ce   : > { %v1122_v50 = vsel %vm785_vm3, %v1121_v47, -inf }
 0x1cf   : > { %1123 = vmax.xlane.f32.xlu0 %v1122_v50  ;;  %v2828_v50 = vld [vmem:[%s4196_s1 + $0xf0] sm:$0xff] }
 0x1d3   : > { %787 = vmax.xlane.f32.xlu0 %v786_v51  ;;  %v1213_v63 = vpop.f32.mrf.mxu0 }
 0x1d4   : > { %v1214_v0 = vadd.f32 %v2788_v62, %v1213_v63  ;;  %v2819_v62 = vld [vmem:[%s4196_s1 + $0x60] sm:$0xff] }
 0x1d5   : > { %v3059_v2 = vpop.f32.mrf.mxu0  ;;  %v2831_v63 = vld [vmem:[%s4199_s2 + $0x7] ss:$0 sm:$0xff] }
 0x1d6   : > { %3061 = vmatpush3.msk.msra.mxu1 %vm1221_vm4, %v1214_v0 }
 0x1d7   : > { %3065 = vmatprep.subr.mxu1 %v3392_v1 }
 0x1db   : > { %v1450_v21 = vpop.f32.mrf.mxu0 }
 0x1dc   : > { %v1451_v32 = vadd.f32 %v2799_v29, %v1450_v21 }
 0x1dd   : > { %v3080_v22 = vpop.f32.mrf.mxu0 }
 0x258   : > { %v1124_v52 = vpop.xlane.xlu0 %1123 }
 0x259   : > { %v1125_v53 = vsub.f32 %v1121_v47, %v1124_v52  ;;  %v2815_v47 = vld [vmem:[%s4200_s4 + $0x2] ss:$0 sm:$0xff] }
 0x25b   : > { %v1126_v54 = vmul.f32 1.442695, %v1125_v53  ;;  %v2827_v53 = vld [vmem:[%s4196_s1 + $0xe8] sm:$0xff] }
 0x25c   : > { %v788_v55 = vpop.xlane.xlu0 %787 }
 0x25d   : > { %3306 = vpow2.f32 %v1126_v54  ;;  %v789_v56 = vsub.f32 %v784_v49, %v788_v55  ;;  %v2829_v49 = vld [vmem:[%s4196_s1 + $0xf8] sm:$0xff]  ;;  %v2826_v54 = vld [vmem:[%s4196_s1 + $0xe0] sm:$0xff] }
 0x25f   : > { %v790_v57 = vmul.f32 1.442695, %v789_v56 }
 0x261   : > { %3308 = vpow2.f32 %v790_v57 }
 0x26a   : > { %v3307_v58 = vpop.eup %3306 }
 0x26b   : > { %v1128_v59 = vsel %vm785_vm3, %v3307_v58, 0.0 }
 0x26c   : > { %1129 = vadd.xlane.f32.xlu1 %v1128_v59 }
 0x26e   : > { %v3309_v60 = vpop.eup %3308 }
 0x26f   : > { %v792_v61 = vsel %vm785_vm3, %v3309_v60, 0.0 }
 0x270   : > { %793 = vadd.xlane.f32.xlu1 %v792_v61  ;;  %v2820_v61 = vld [vmem:[%s4196_s1 + $0x68] sm:$0xff] }
 0x2f5   : > { %v1130_v8 = vpop.xlane.xlu1 %1129 }
 0x2f6   : > { %3310 = vrcp.f32 %v1130_v8  ;;  %v2824_v8 = vld [vmem:[%s4199_s2 + $0x3] ss:$0 sm:$0xff]  ;;  %s3330_s2 = scalar_lea.vmem %s2634_s23, 32 }
 0x2f7   : > { %p3331_p11 = scmp.ne.s32.totalorder %s2634_s23, %s3330_s2 }
 0x2f9   : > { %v794_v9 = vpop.xlane.xlu1 %793  ;;  %p3332_p12 = pnand %p3331_p11, %p3519_p5 }
 0x2fa   : > { %3312 = vrcp.f32 %v794_v9 }
 0x2fb   : > { %p3333_p13 = pneg %p3332_p12 }
 0x303   : > { %v3311_v11 = vpop.eup %3310 }
 0x304   : > { %v1132_v12 = vmul.f32 %v3311_v11, %v3307_v58  ;;  %v2822_v58 = vld [vmem:[%s4196_s1 + $0x78] sm:$0xff] }
 0x306   : > { %3063 = vmatmul.mubr.msk.f32.vlgmr.msra.gmra.mxu1 %vm1217_vm5, %v1132_v12 }
 0x307   : > { %v3313_v14 = vpop.eup %3312  ;;  %3066 = vmatpush3.msk.msra.mxu1 %vm1221_vm4, %v876_v13  ;;  %3067 = vmatprep.mubr.msk.f32.mxu1 %vm3393_vm0, %v3392_v1  ;;  %v2837_v13 = vld [vmem:[%s4198_s3 + $0x70] sm:$0xff] }
 0x308   : > { %3081 = vmatprep.subr.mxu1 %v3392_v1  ;;  %v796_v15 = vmul.f32 %v3313_v14, %v3309_v60  ;;  %v2821_v60 = vld [vmem:[%s4196_s1 + $0x70] sm:$0xff]  ;;  %v2836_v14 = vld [vmem:[%s4198_s3 + $0x68] sm:$0xff] }
 0x30a   : > { %v3730_v17 = vadd.f32 %v1132_v12, %v796_v15  ;;  %3068 = vmatmul.mubr.msk.f32.vlgmr.msra.gmra.mxu1 %vm1217_vm5, %v796_v15  ;;  %v2838_v12 = vld [vmem:[%s4198_s3 + $0x78] sm:$0xff]  ;;  %v2835_v15 = vld [vmem:[%s4198_s3 + $0x60] sm:$0xff]  ;;  %s3395_s3 = smov [#allocation2]  }
 0x30b   : > { %3082 = vmatpush3.msra.mxu1 %v2804_v16  ;;  %3089 = vmatprep.mubr.msk.f32.mxu1 %vm3393_vm0, %v3392_v1 }
 0x30c   : > { %3083 = vmatprep.subr.mxu1 %v3392_v1 }
 0x30d   : > { %3084 = vmatpush3.msra.mxu1 %v2803_v18 }
 0x30e   : > { %3085 = vmatprep.subr.mxu1 %v3392_v1 }
 0x30f   : > { %3086 = vmatpush3.msra.mxu1 %v2802_v19 }
 0x310   : > { %3087 = vmatprep.subr.mxu1 %v3392_v1 }
 0x311   : > { %3088 = vmatpush3.msra.mxu1 %v2801_v20 }
 0x312   : > { %3090 = vmatmul.mubr.msk.f32.vlgmr.msra.gmra.mxu1 %vm550_vm1, %v3557_v5  ;;  %3097 = vmatprep.subr.mxu1 %v3392_v1 }
 0x313   : > { %3105 = vmatprep.mubr.msk.f32.mxu1 %vm3393_vm0, %v3392_v1  ;;  %3098 = vmatpush3.msra.mxu1 %v2813_v34  ;;  %v2215_v34 = vld [vmem:[%s4167_s6 + $0x10] sm:$0xff] }
 0x314   : > { %3099 = vmatprep.subr.mxu1 %v3392_v1 }
 0x315   : > { %3100 = vmatpush3.msra.mxu1 %v2812_v35  ;;  %v2214_v35 = vld [vmem:[%s4167_s6 + $0x8] sm:$0xff] }
 0x316   : > { %3101 = vmatprep.subr.mxu1 %v3392_v1 }
 0x317   : > { %3102 = vmatpush3.msra.mxu1 %v2811_v36  ;;  %v2213_v36 = vld [vmem:[%s4167_s6] sm:$0xff] }
 0x318   : > { %3103 = vmatprep.subr.mxu1 %v3392_v1 }
 0x319   : > { %3104 = vmatpush3.msra.mxu1 %v2810_v37  ;;  %v2313_v37 = vld [vmem:[%s4169_s8 + $0x78] sm:$0xff] }
 0x31a   : > { %3106 = vmatmul.mubr.msk.f32.vlgmr.msra.gmra.mxu1 %vm550_vm1, %v3557_v5  ;;  %3124 = vmatprep.subr.mxu1 %v3392_v1 }
 0x31b   : > { %3132 = vmatprep.mubr.msk.f32.mxu1 %vm3393_vm0, %v3392_v1  ;;  %3125 = vmatpush3.msra.mxu1 %v2829_v49  ;;  %v2301_v49 = vld [vmem:[%s4169_s8 + $0x18] sm:$0xff] }
 0x31c   : > { %3126 = vmatprep.subr.mxu1 %v3392_v1 }
 0x31d   : > { %3127 = vmatpush3.msra.mxu1 %v2828_v50 }
 0x31e   : > { %3128 = vmatprep.subr.mxu1 %v3392_v1 }
 0x31f   : > { %3129 = vmatpush3.msra.mxu1 %v2827_v53 }
 0x320   : > { %3130 = vmatprep.subr.mxu1 %v3392_v1 }
 0x321   : > { %3131 = vmatpush3.msra.mxu1 %v2826_v54 }
 0x322   : > { %3133 = vmatmul.mubr.msk.f32.vlgmr.msra.gmra.mxu1 %vm550_vm1, %v3557_v5  ;;  %3140 = vmatprep.subr.mxu1 %v3392_v1 }
 0x323   : > { %3148 = vmatprep.mubr.msk.f32.mxu1 %vm3393_vm0, %v3392_v1  ;;  %3141 = vmatpush3.msra.mxu1 %v2838_v12  ;;  %v2392_v12 = vld [vmem:[%s4171_s10] sm:$0xff] }
 0x324   : > { %3142 = vmatprep.subr.mxu1 %v3392_v1 }
 0x325   : > { %3143 = vmatpush3.msra.mxu1 %v2837_v13  ;;  %v2847_v13 = vld [vmem:[%s4170_s9] ss:$0 sm:$0xff] }
 0x326   : > { %3144 = vmatprep.subr.mxu1 %v3392_v1 }
 0x327   : > { %3145 = vmatpush3.msra.mxu1 %v2836_v14 }
 0x328   : > { %3146 = vmatprep.subr.mxu1 %v3392_v1 }
 0x329   : > { %3147 = vmatpush3.msra.mxu1 %v2835_v15 }
 0x32a   : > { %3149 = vmatmul.mubr.msk.f32.vlgmr.msra.gmra.mxu1 %vm550_vm1, %v3557_v5  ;;  %3167 = vmatprep.subr.mxu1 %v3392_v1 }
 0x32b   : > { %3199 = vmatprep.mubr.msk.f32.mxu1 %vm3393_vm0, %v3392_v1  ;;  %3168 = vmatpush3.msra.mxu1 %v2313_v37 }
 0x32c   : > { %3169 = vmatprep.subr.mxu1 %v3392_v1 }
 0x3c6   : > { %v1291_v23 = vpop.f32.mrf.mxu1 }
 0x3c8   : > { %v3064_v24 = vpop.f32.mrf.mxu1 }
 0x3ca   : > { %v1367_v25 = vpop.f32.mrf.mxu1 }
 0x3cb   : > { %v3752_v26 = vadd.f32 %v1367_v25, %v1291_v23 }
 0x3cc   : > { %v3069_v27 = vpop.f32.mrf.mxu1 }
 0x3d2   : > { %v1533_v30 = vpop.f32.mrf.mxu1 }
 0x3d3   : > { %v1534_v31 = vadd.f32 %v2806_v28, %v1533_v30 }
 0x3d4   : > { %v3091_v33 = vpop.f32.mrf.mxu1 }
 0x3d5   : > { %3093 = vmatpush3.xpose.msk.msra.mxu0 %vm707_vm2, %v1534_v31  ;;  %v2216_v31 = vld [vmem:[%s4167_s6 + $0x18] sm:$0xff] }
 0x3d6   : > { %3108 = vmatprep.subr.mxu0 %v3392_v1 }
 0x3d8   : > { %3095 = vmatmul.mubr.msk.f32.vlgmr.msra.gmra.mxu0 %vm707_vm2, %v1451_v32 }
 0x3d9   : > { %3110 = vmatprep.mubr.msk.f32.mxu0 %vm3393_vm0, %v3392_v1 }
 0x3da   : > { %v1705_v48 = vpop.f32.mrf.mxu1 }
 0x3db   : > { %v1706_v51 = vadd.f32 %v2815_v47, %v1705_v48  ;;  %v2303_v47 = vld [vmem:[%s4169_s8 + $0x28] sm:$0xff]  ;;  %v2302_v48 = vld [vmem:[%s4169_s8 + $0x20] sm:$0xff] }
 0x3dc   : > { %v3107_v52 = vpop.f32.mrf.mxu1 }
 0x3dd   : > { %3109 = vmatpush3.msk.msra.mxu0 %vm1221_vm4, %v1706_v51  ;;  %v2844_v51 = vld [vmem:[%s4166_s5] ss:$0 sm:$0xff] }
 0x3de   : > { %3113 = vmatprep.subr.mxu0 %v3392_v1 }
 0x3e2   : > { %v1948_v0 = vpop.f32.mrf.mxu1 }
 0x3e3   : > { %v1949_v2 = vadd.f32 %v2831_v63, %v1948_v0  ;;  %v2398_v63 = vld [vmem:[%s4171_s10 + $0x30] sm:$0xff]  ;;  %v2397_v0 = vld [vmem:[%s4171_s10 + $0x28] sm:$0xff] }
 0x3e4   : > { %v3134_v3 = vpop.f32.mrf.mxu1 }
 0x3e5   : > { %v2395_v3 = vld [vmem:[%s4171_s10 + $0x18] sm:$0xff] }
 0x3ea   : > { %v2120_v25 = vpop.f32.mrf.mxu1 }
 0x3ec   : > { %v3150_v27 = vpop.f32.mrf.mxu1 }
 0x3ed   : > { %v2490_v27 = vld [vmem:[%s4173_s12 + $0x28] sm:$0xff] }
 0x498   : > { %v1609_v38 = vpop.f32.mrf.mxu0 }
 0x499   : > { %v1613_v39 = vmul.f32 0.35355338, %v1609_v38  ;;  %v2312_v38 = vld [vmem:[%s4169_s8 + $0x70] sm:$0xff] }
 0x49a   : > { %v3096_v40 = vpop.f32.mrf.mxu0  ;;  %3170 = vmatpush3.msra.mxu1 %v2312_v38 }
 0x49b   : > { %v1614_v41 = vsel %vm785_vm3, %v1613_v39, -inf  ;;  %3171 = vmatprep.subr.mxu1 %v3392_v1  ;;  %v2310_v40 = vld [vmem:[%s4169_s8 + $0x60] sm:$0xff] }
 0x49c   : > { %1615 = vmax.xlane.f32.xlu0 %v1614_v41  ;;  %v2309_v41 = vld [vmem:[%s4169_s8 + $0x58] sm:$0xff] }
 0x525   : > { %v1616_v42 = vpop.xlane.xlu0 %1615 }
 0x526   : > { %v1617_v43 = vsub.f32 %v1613_v39, %v1616_v42  ;;  %v2311_v39 = vld [vmem:[%s4169_s8 + $0x68] sm:$0xff]  ;;  %v2308_v42 = vld [vmem:[%s4169_s8 + $0x50] sm:$0xff] }
 0x527   : > { %3172 = vmatpush3.msra.mxu1 %v2311_v39 }
 0x528   : > { %v1618_v44 = vmul.f32 1.442695, %v1617_v43  ;;  %3173 = vmatprep.subr.mxu1 %v3392_v1  ;;  %v2307_v43 = vld [vmem:[%s4169_s8 + $0x48] sm:$0xff] }
 0x529   : > { %3174 = vmatpush3.msra.mxu1 %v2310_v40  ;;  %v2850_v40 = vld [vmem:[%s4174_s13] ss:$0 sm:$0xff] }
 0x52a   : > { %3314 = vpow2.f32 %v1618_v44  ;;  %3175 = vmatprep.subr.mxu1 %v3392_v1  ;;  %v2306_v44 = vld [vmem:[%s4169_s8 + $0x40] sm:$0xff] }
 0x52b   : > { %3176 = vmatpush3.msra.mxu1 %v2309_v41 }
 0x52c   : > { %3177 = vmatprep.subr.mxu1 %v3392_v1 }
 0x52d   : > { %3178 = vmatpush3.msra.mxu1 %v2308_v42 }
 0x52e   : > { %3179 = vmatprep.subr.mxu1 %v3392_v1 }
 0x52f   : > { %3180 = vmatpush3.msra.mxu1 %v2307_v43 }
 0x530   : > { %3181 = vmatprep.subr.mxu1 %v3392_v1 }
 0x531   : > { %3182 = vmatpush3.msra.mxu1 %v2306_v44 }
 0x532   : > { %3183 = vmatprep.subr.mxu1 %v3392_v1 }
 0x537   : > { %v3315_v45 = vpop.eup %3314 }
 0x538   : > { %v1620_v46 = vsel %vm785_vm3, %v3315_v45, 0.0 }
 0x539   : > { %1621 = vadd.xlane.f32.xlu1 %v1620_v46  ;;  %v2304_v46 = vld [vmem:[%s4169_s8 + $0x30] sm:$0xff] }
 0x5c2   : > { %v1622_v55 = vpop.xlane.xlu1 %1621 }
 0x5c3   : > { %3316 = vrcp.f32 %v1622_v55  ;;  %v2300_v55 = vld [vmem:[%s4169_s8 + $0x10] sm:$0xff] }
 0x5d0   : > { %v3317_v56 = vpop.eup %3316 }
 0x5d1   : > { %v1624_v57 = vmul.f32 %v3317_v56, %v3315_v45  ;;  %v2305_v45 = vld [vmem:[%s4169_s8 + $0x38] sm:$0xff]  ;;  %v2299_v56 = vld [vmem:[%s4169_s8 + $0x8] sm:$0xff] }
 0x5d2   : > { %3184 = vmatpush3.msra.mxu1 %v2305_v45 }
 0x5d3   : > { %v3816_v59 = vadd.f32 %v1624_v57, %v3730_v17  ;;  %3111 = vmatmul.mubr.msk.f32.vlgmr.msra.gmra.mxu0 %vm1217_vm5, %v1624_v57  ;;  %3185 = vmatprep.subr.mxu1 %v3392_v1  ;;  %v2298_v57 = vld [vmem:[%s4169_s8] sm:$0xff] }
 0x5d4   : > { %3114 = vmatpush3.msra.mxu0 %v2822_v58  ;;  %3121 = vmatprep.mubr.msk.f32.mxu0 %vm3393_vm0, %v3392_v1  ;;  %v2403_v58 = vld [vmem:[%s4171_s10 + $0x58] sm:$0xff] }
 0x5d5   : > { %3115 = vmatprep.subr.mxu0 %v3392_v1  ;;  %3186 = vmatpush3.msra.mxu1 %v2304_v46 }
 0x5d6   : > { %3116 = vmatpush3.msra.mxu0 %v2821_v60  ;;  %3187 = vmatprep.subr.mxu1 %v3392_v1  ;;  %v2401_v60 = vld [vmem:[%s4171_s10 + $0x48] sm:$0xff] }
 0x5d7   : > { %3117 = vmatprep.subr.mxu0 %v3392_v1  ;;  %3188 = vmatpush3.msra.mxu1 %v2303_v47 }
 0x5d8   : > { %3118 = vmatpush3.msra.mxu0 %v2820_v61  ;;  %3189 = vmatprep.subr.mxu1 %v3392_v1  ;;  %v2400_v61 = vld [vmem:[%s4171_s10 + $0x40] sm:$0xff] }
 0x5d9   : > { %3119 = vmatprep.subr.mxu0 %v3392_v1  ;;  %3190 = vmatpush3.msra.mxu1 %v2302_v48 }
 0x5da   : > { %3120 = vmatpush3.msra.mxu0 %v2819_v62  ;;  %3191 = vmatprep.subr.mxu1 %v3392_v1  ;;  %v2399_v62 = vld [vmem:[%s4171_s10 + $0x38] sm:$0xff] }
 0x5db   : > { %3122 = vmatmul.mubr.msk.f32.vlgmr.msra.gmra.mxu0 %vm550_vm1, %v3557_v5  ;;  %3135 = vmatprep.subr.mxu0 %v3392_v1  ;;  %v2840_v5 = vld [vmem:[%s4200_s4 + $0x3] ss:$0 sm:$0xff]  ;;  %s3334_s4 = sshll.u32 %s3395_s3, 4  ;;  %s3335_s4 = int_to_ptr.vmem [resolvable:$false] %s3334_s4 }
 0x5dc   : > { %3137 = vmatprep.mubr.msk.f32.mxu0 %vm3393_vm0, %v3392_v1  ;;  %3136 = vmatpush3.xpose.msk.msra.mxu0 %vm707_vm2, %v1949_v2  ;;  %v2396_v2 = vld [vmem:[%s4171_s10 + $0x20] sm:$0xff]  ;;  %p3337_p0 = scmp.lt.s32.totalorder %s2634_s23, %s3335_s4 }
 0x5dd   : > { %3151 = vmatprep.subr.mxu0 %v3392_v1  ;;  %3192 = vmatpush3.msra.mxu1 %v2301_v49 }
 0x5de   : > { %3193 = vmatprep.subr.mxu1 %v3392_v1 }
 0x5df   : > { %3194 = vmatpush3.msra.mxu1 %v2300_v55 }
 0x5e0   : > { %3195 = vmatprep.subr.mxu1 %v3392_v1 }
 0x5e1   : > { %3196 = vmatpush3.msra.mxu1 %v2299_v56 }
 0x5e2   : > { %3197 = vmatprep.subr.mxu1 %v3392_v1 }
 0x5e3   : > { %3198 = vmatpush3.msra.mxu1 %v2298_v57 }
 0x693   : > { %v1781_v4 = vpop.f32.mrf.mxu0 }
 0x694   : > { %v3844_v6 = vadd.f32 %v1781_v4, %v3752_v26  ;;  %v2121_v26 = vadd.f32 %v2840_v5, %v2120_v25  ;;  %v2394_v4 = vld [vmem:[%s4171_s10 + $0x10] sm:$0xff]  ;;  %v2493_v5 = vld [vmem:[%s4173_s12 + $0x40] sm:$0xff]  ;;  %v2492_v25 = vld [vmem:[%s4173_s12 + $0x38] sm:$0xff] }
 0x695   : > { %v3112_v7 = vpop.f32.mrf.mxu0 }
 0x69b   : > { %v1865_v9 = vpop.f32.mrf.mxu0 }
 0x69c   : > { %v1866_v10 = vadd.f32 %v2824_v8, %v1865_v9 }
 0x69d   : > { %v3123_v11 = vpop.f32.mrf.mxu0 }
 0x69e   : > { %3138 = vmatmul.mubr.msk.f32.vlgmr.msra.gmra.mxu0 %vm707_vm2, %v1866_v10  ;;  %v2393_v11 = vld [vmem:[%s4171_s10 + $0x8] sm:$0xff] }
 0x69f   : > { %3153 = vmatprep.mubr.msk.f32.mxu0 %vm3393_vm0, %v3392_v1  ;;  %3152 = vmatpush3.msk.msra.mxu0 %vm1221_vm4, %v2121_v26  ;;  %v2491_v26 = vld [vmem:[%s4173_s12 + $0x30] sm:$0xff] }
 0x6a0   : > { %3156 = vmatprep.subr.mxu0 %v3392_v1 }
 0x75e   : > { %v2024_v16 = vpop.f32.mrf.mxu0 }
 0x75f   : > { %v2028_v17 = vmul.f32 0.35355338, %v2024_v16 }
 0x760   : > { %v3139_v18 = vpop.f32.mrf.mxu0 }
 0x761   : > { %v2029_v19 = vsel %vm785_vm3, %v2028_v17, -inf  ;;  %v2500_v18 = vld [vmem:[%s4173_s12 + $0x78] sm:$0xff] }
 0x762   : > { %2030 = vmax.xlane.f32.xlu0 %v2029_v19  ;;  %v2499_v19 = vld [vmem:[%s4173_s12 + $0x70] sm:$0xff] }
 0x7eb   : > { %v2031_v20 = vpop.xlane.xlu0 %2030 }
 0x7ec   : > { %v2032_v21 = vsub.f32 %v2028_v17, %v2031_v20  ;;  %v2498_v20 = vld [vmem:[%s4173_s12 + $0x68] sm:$0xff] }
 0x7ee   : > { %v2033_v22 = vmul.f32 1.442695, %v2032_v21  ;;  %v2497_v21 = vld [vmem:[%s4173_s12 + $0x60] sm:$0xff] }
 0x7f0   : > { %3318 = vpow2.f32 %v2033_v22  ;;  %v2496_v22 = vld [vmem:[%s4173_s12 + $0x58] sm:$0xff] }
 0x7fd   : > { %v3319_v23 = vpop.eup %3318 }
 0x7fe   : > { %v2035_v24 = vsel %vm785_vm3, %v3319_v23, 0.0 }
 0x7ff   : > { %2036 = vadd.xlane.f32.xlu1 %v2035_v24  ;;  %v2494_v24 = vld [vmem:[%s4173_s12 + $0x48] sm:$0xff] }
 0x888   : > { %v2037_v28 = vpop.xlane.xlu1 %2036 }
 0x889   : > { %3320 = vrcp.f32 %v2037_v28  ;;  %v2489_v28 = vld [vmem:[%s4173_s12 + $0x20] sm:$0xff] }
 0x896   : > { %v3321_v29 = vpop.eup %3320 }
 0x897   : > { %v2039_v30 = vmul.f32 %v3321_v29, %v3319_v23  ;;  %v2495_v23 = vld [vmem:[%s4173_s12 + $0x50] sm:$0xff]  ;;  %v2488_v29 = vld [vmem:[%s4173_s12 + $0x18] sm:$0xff] }
 0x899   : > { %v2040_v32 = vadd.f32 %v2039_v30, %v3816_v59  ;;  %3154 = vmatmul.mubr.msk.f32.vlgmr.msra.gmra.mxu0 %vm1217_vm5, %v2039_v30  ;;  %v2402_v59 = vld [vmem:[%s4171_s10 + $0x50] sm:$0xff] }
 0x89a   : > { %3157 = vmatpush3.msra.mxu0 %v2216_v31  ;;  %3164 = vmatprep.mubr.msk.f32.mxu0 %vm3393_vm0, %v3392_v1  ;;  %v2487_v30 = vld [vmem:[%s4173_s12 + $0x10] sm:$0xff]  ;;  %v2486_v31 = vld [vmem:[%s4173_s12 + $0x8] sm:$0xff] }
 0x89b   : > { %v2211_v33 = vmul.f32 0.25, %v2040_v32  ;;  %3158 = vmatprep.subr.mxu0 %v3392_v1  ;;  %v2485_v32 = vld [vmem:[%s4173_s12] sm:$0xff] }
 0x89c   : > { %3159 = vmatpush3.msra.mxu0 %v2215_v34 }
 0x89d   : > { %2212 = vst.msk [vmem:[%s533_s26] sm:$0x3] %vm785_vm3, %v2211_v33  ;;  %3160 = vmatprep.subr.mxu0 %v3392_v1  ;;  %v2848_v33 = vld [vmem:[%s4172_s11] ss:$0 sm:$0xff] }
 0x89e   : > { %3161 = vmatpush3.msra.mxu0 %v2214_v35 }
 0x89f   : > { %3162 = vmatprep.subr.mxu0 %v3392_v1 }
 0x8a0   : > { %3163 = vmatpush3.msra.mxu0 %v2213_v36 }
 0x8a1   : > { %3202 = vmatprep.subr.mxu0 %v3392_v1 }
 0x959   : > { %v2196_v50 = vpop.f32.mrf.mxu0 }
 0x95a   : > { %v2200_v52 = vadd.f32 %v2196_v50, %v3844_v6  ;;  %v2845_v6 = vld [vmem:[%s4168_s7] ss:$0 sm:$0xff] }
 0x95b   : > { %v3155_v53 = vpop.f32.mrf.mxu0 }
 0x95c   : > { %v2208_v54 = vadd.f32 %v2844_v51, %v2200_v52 }
 0x95e   : > { %3165 = vmatmul.mubr.msk.f32.vlgmr.msra.gmra.mxu0 %vm550_vm1, %v2208_v54  ;;  %2210 = vst.msk [vmem:[%s4183_s29] sm:$0x3] %vm2209_vm6, %v2208_v54  ;;  %s4202_s29 = sand.u32 1, %s3382_s22  }
 0x95f   : > { %3226 = vmatprep.mubr.msk.f32.mxu0 %vm3393_vm0, %v3392_v1  ;;  %3203 = vmatpush3.msra.mxu0 %v2403_v58  ;;  %s2612_s1 = scalar_lea.sflag [#allocation3], %s4202_s29 }
 0x960   : > { %3204 = vmatprep.subr.mxu0 %v3392_v1 }
 0x961   : > { %3205 = vmatpush3.msra.mxu0 %v2402_v59 }
 0x962   : > { %3206 = vmatprep.subr.mxu0 %v3392_v1 }
 0x963   : > { %3207 = vmatpush3.msra.mxu0 %v2401_v60 }
 0x964   : > { %3208 = vmatprep.subr.mxu0 %v3392_v1 }
 0x965   : > { %3209 = vmatpush3.msra.mxu0 %v2400_v61 }
 0x966   : > { %3210 = vmatprep.subr.mxu0 %v3392_v1 }
 0x967   : > { %3211 = vmatpush3.msra.mxu0 %v2399_v62 }
 0x968   : > { %3212 = vmatprep.subr.mxu0 %v3392_v1 }
 0x969   : > { %3213 = vmatpush3.msra.mxu0 %v2398_v63 }
 0x96a   : > { %3214 = vmatprep.subr.mxu0 %v3392_v1 }
 0x96b   : > { %3215 = vmatpush3.msra.mxu0 %v2397_v0 }
 0x96c   : > { %3216 = vmatprep.subr.mxu0 %v3392_v1 }
 0x96d   : > { %3217 = vmatpush3.msra.mxu0 %v2396_v2 }
 0x96e   : > { %3218 = vmatprep.subr.mxu0 %v3392_v1 }
 0x96f   : > { %3219 = vmatpush3.msra.mxu0 %v2395_v3 }
 0x970   : > { %3220 = vmatprep.subr.mxu0 %v3392_v1 }
 0x971   : > { %3221 = vmatpush3.msra.mxu0 %v2394_v4 }
 0x972   : > { %3222 = vmatprep.subr.mxu0 %v3392_v1 }
 0x973   : > { %3223 = vmatpush3.msra.mxu0 %v2393_v11 }
 0x974   : > { %3224 = vmatprep.subr.mxu0 %v3392_v1 }
 0x975   : > { %3225 = vmatpush3.msra.mxu0 %v2392_v12 }
 0x976   : > { %3229 = vmatprep.subr.mxu0 %v3392_v1 }
 0xa1e   : > { %v2293_v7 = vpop.f32.mrf.mxu0 }
 0xa1f   : > { %v4025_v8 = vadd.f32 %v2845_v6, %v2293_v7 }
 0xa20   : > { %v3166_v9 = vpop.f32.mrf.mxu0 }
 0xa21   : > { %v2297_v10 = vmax.f32 %v4025_v8, 0.0 }
 0xa23   : > { %3200 = vmatmul.mubr.f32.vlgmr.msra.gmra.mxu1 %v2297_v10 }
 0xae3   : > { %v2387_v14 = vpop.f32.mrf.mxu1 }
 0xae4   : > { %v2388_v15 = vadd.f32 %v2847_v13, %v2387_v14 }
 0xae5   : > { %v3201_v16 = vpop.f32.mrf.mxu1 }
 0xae6   : > { %v2391_v17 = vmax.f32 %v2388_v15, 0.0 }
 0xae8   : > { %3227 = vmatmul.mubr.msk.f32.vlgmr.msra.gmra.mxu0 %vm2411_vm7, %v2391_v17 }
 0xae9   : > { %3230 = vmatpush3.msra.mxu0 %v2500_v18  ;;  %3261 = vmatprep.mubr.msk.f32.mxu0 %vm3393_vm0, %v3392_v1 }
 0xaea   : > { %3231 = vmatprep.subr.mxu0 %v3392_v1 }
 0xaeb   : > { %3232 = vmatpush3.msra.mxu0 %v2499_v19 }
 0xaec   : > { %3233 = vmatprep.subr.mxu0 %v3392_v1 }
 0xaed   : > { %3234 = vmatpush3.msra.mxu0 %v2498_v20 }
 0xaee   : > { %3235 = vmatprep.subr.mxu0 %v3392_v1 }
 0xaef   : > { %3236 = vmatpush3.msra.mxu0 %v2497_v21 }
 0xaf0   : > { %3237 = vmatprep.subr.mxu0 %v3392_v1 }
 0xaf1   : > { %3238 = vmatpush3.msra.mxu0 %v2496_v22 }
 0xaf2   : > { %3239 = vmatprep.subr.mxu0 %v3392_v1 }
 0xaf3   : > { %3240 = vmatpush3.msra.mxu0 %v2495_v23 }
 0xaf4   : > { %3241 = vmatprep.subr.mxu0 %v3392_v1 }
 0xaf5   : > { %3242 = vmatpush3.msra.mxu0 %v2494_v24 }
 0xaf6   : > { %3243 = vmatprep.subr.mxu0 %v3392_v1 }
 0xaf7   : > { %3244 = vmatpush3.msra.mxu0 %v2493_v5 }
 0xaf8   : > { %3245 = vmatprep.subr.mxu0 %v3392_v1 }
 0xaf9   : > { %3246 = vmatpush3.msra.mxu0 %v2492_v25 }
 0xafa   : > { %3247 = vmatprep.subr.mxu0 %v3392_v1 }
 0xafb   : > { %3248 = vmatpush3.msra.mxu0 %v2491_v26 }
 0xafc   : > { %3249 = vmatprep.subr.mxu0 %v3392_v1 }
 0xafd   : > { %3250 = vmatpush3.msra.mxu0 %v2490_v27 }
 0xafe   : > { %3251 = vmatprep.subr.mxu0 %v3392_v1 }
 0xaff   : > { %3252 = vmatpush3.msra.mxu0 %v2489_v28 }
 0xb00   : > { %3253 = vmatprep.subr.mxu0 %v3392_v1 }
 0xb01   : > { %3254 = vmatpush3.msra.mxu0 %v2488_v29 }
 0xb02   : > { %3255 = vmatprep.subr.mxu0 %v3392_v1 }
 0xb03   : > { %3256 = vmatpush3.msra.mxu0 %v2487_v30 }
 0xb04   : > { %3257 = vmatprep.subr.mxu0 %v3392_v1 }
 0xb05   : > { %3258 = vmatpush3.msra.mxu0 %v2486_v31 }
 0xb06   : > { %3259 = vmatprep.subr.mxu0 %v3392_v1 }
 0xb07   : > { %3260 = vmatpush3.msra.mxu0 %v2485_v32 }
 0xb08   : > { %3262 = vmatmul.mubr.f32.vlgmr.msra.gmra.mxu0 %v2297_v10 }
 0xba8   : > { %v2481_v34 = vpop.f32.mrf.mxu0 }
 0xba9   : > { %v2482_v35 = vadd.f32 %v2848_v33, %v2481_v34 }
 0xbaa   : > { %v3228_v36 = vpop.f32.mrf.mxu0 }
 0xbab   : > { %v2851_v37 = vmul.f32 -1.442695, %v2482_v35 }
 0xbad   : > { %3322 = vpow2.f32 %v2851_v37 }
 0xbba   : > { %v3323_v38 = vpop.eup %3322 }
 0xbbb   : > { %v2581_v39 = vadd.f32 1.0, %v3323_v38 }
 0xbbd   : > { %3324 = vrcp.f32 %v2581_v39 }
 0xbc8   : > { %v2574_v41 = vpop.f32.mrf.mxu0 }
 0xbc9   : > { %v2575_v1 = vadd.f32 %v2850_v40, %v2574_v41 }
 0xbca   : > { %v3325_v42 = vpop.eup %3324  ;;  %v3263_v43 = vpop.f32.mrf.mxu0 }
 0xbcb   : > { %v2588_v44 = vsel %vm785_vm3, %v2575_v1, -inf  ;;  %2585 = vst.msk [vmem:[%s4114_s28] sm:$0x3] %vm2584_vm8, %v3325_v42 }
 0xbcc   : > { %2589 = vmax.xlane.f32.xlu0 %v2588_v44  ;;  %2587 = vst.msk [vmem:[%s4114_s28] sm:$0x3] %vm2586_vm9, %v2482_v35 }
 0xc55   : > { %v2590_v45 = vpop.xlane.xlu0 %2589 }
 0xc56   : > { %v2591_v46 = vsub.f32 %v2575_v1, %v2590_v45 }
 0xc58   : > { %v2592_v47 = vmul.f32 1.442695, %v2591_v46 }
 0xc5a   : > { %3326 = vpow2.f32 %v2592_v47 }
 0xc67   : > { %v3327_v48 = vpop.eup %3326 }
 0xc68   : > { %v2594_v49 = vsel %vm785_vm3, %v3327_v48, 0.0 }
 0xc69   : > { %2595 = vadd.xlane.f32.xlu1 %v2594_v49 }
 0xc7a   : > { %2606 = vrot.lane.b32.xlu1 %v2575_v1, %s4184_s19  ;;  %s3336_s19 = scalar_lea.vmem %s3335_s4, 64 }
 0xc7b   : > { %p3338_p1 = scmp.lt.s32.totalorder %s3336_s19, %s3330_s2 }
 0xc7d   : > { %p3339_p2 = por %p3338_p1, %p3337_p0 }
 0xc7f   : > { %p3340_p3 = pnand %p3339_p2, %p3333_p13 }
 0xcf2   : > { %v2596_v50 = vpop.xlane.xlu1 %2595 }
 0xcf3   : > { %3328 = vrcp.f32 %v2596_v50 }
 0xcf4   : > { %3343 = shalt.err (!%p3340_p3)
}
 0xcf5   : > { %s3344_s25 = scalar_lea.hbm %s2631_s27, 32  ;;  %s3348_s20 = scalar_lea.hbm %s4175_s14, 256 }
 0xcf6   : > { %p3345_p4 = scmp.ne.s32.totalorder %s2631_s27, %s3344_s25  ;;  %p3349_p9 = scmp.lt.s32.totalorder %s2631_s27, %s4175_s14 }
 0xcf7   : > { %p3350_p10 = scmp.lt.s32.totalorder %s3348_s20, %s3344_s25 }
 0xcf8   : > { %p3346_p7 = pnand %p3345_p4, %p3519_p5 }
 0xcf9   : > { %p3351_p11 = por %p3350_p10, %p3349_p9 }
 0xcfa   : > { %p3347_p8 = pneg %p3346_p7 }
 0xcfc   : > { %p3352_p12 = pnand %p3351_p11, %p3347_p8 }
 0xcfe   : > { %3355 = shalt.err (!%p3352_p12)
}
 0xcff   : > { %3264 = dma.vmem_to_hbm [thread:$0]  (%p3519_p5), %s2634_s23, 32, %s2631_s27, %s2612_s1   ;;  %vm2603_vm10 = vcmask 25616   ;;  %vm2609_vm11 = vcmask 33824   ;;  %v2607_v54 = vpop.permute.xlu1 %2606 }
 0xd00   : > { %v3329_v51 = vpop.eup %3328  ;;  %s4203_s2 = smov 2  }
 0xd01   : > { %v2598_v52 = vmul.f32 %v3329_v51, %v3327_v48 }
 0xd03   : > { %2600 = vrot.lane.b32.xlu0 %v2598_v52, %s4203_s2 }
 0xd75   : > { %v2601_v53 = vpop.permute.xlu0 %2600 }
 0xd76   : > { %2604 = vst.msk [vmem:[%s4114_s28] sm:$0x3] %vm2603_vm10, %v2601_v53 }
 0xd77   : > { %2610 = vst.msk [vmem:[%s4114_s28] sm:$0x3] %vm2609_vm11, %v2607_v54 }
 0xd78 PF: > { %p3270_p13 = scmp.ge.s32.totalorder %s3390_s24, 2  ;;  %s2651_s4 = sand.u32 1, %s3378_s21  }
 0xd79   : > { %s2652_s1 = scalar_lea.sflag [#allocation3], %s2651_s4 }
 0xd7a   : > { %p3267_p0 = pnand %p3270_p13, %p3523_p6 }
 0xd7c   : > { %p3268_p1 = pneg %p3267_p0 }
 0xd7e   : > { %3373 = dma.done.wait (%p3268_p1), %s2652_s1, 32  }
 0xd7f   : > { %3375 = vsyncadd (%p3268_p1), %s2652_s1, 4294967264  ;;  %s4205_s24 = sld [smem:[#allocation6_spill]]  ;;  %s4208_s21 = smov %s3382_s22 }
 0xd80   : > { %s4206_s0 = sld [smem:[#allocation5_spill]] }
 0xd81   : > { %s4207_s23 = sld [smem:[#allocation7_spill]] }
 0xd85   : > { %p27_p5 = scmp.ge.s32.totalorder %s4205_s24, 10  }
 0xd86   : > { %s4209_s22 = smov %s4206_s0 }
 0xd87   :  { %29 = sbr.rel (!%p27_p5) target bundleno = 9 (0x9), region = 155 }
 0xd8c   :  { %2671 = vsyncpa [#allocation3], 1 }
 0xd8d   :  { %2673 = vsyncpa [#allocation3 + $0x1], 1 }

</bundles_post_ra>
